<compile_context>
chip_gen: v6e
topology: v6e:2x2x1
jax: 0.10.0
libtpu: 0.0.40
codegen_flags: <defaults>
</compile_context>

<pallas_src>
import numpy as np
import jax
import jax.numpy as jnp
from jax import lax
from jax.experimental import pallas as pl
from jax.experimental.pallas import tpu as pltpu


def bilstm_kernel(x_ref, lens_ref, wih_ref, b_ref, whh_ref, wlin_ref, blin_ref,
                  out_ref, gx_ref):
    # x_ref   : (T, Bt, E)  bf16  time-major inputs for this batch tile
    # lens_ref: (Bt, 1)     int32 sorted sequence lengths (0 for pad rows)
    # wih_ref : (E, 8H)     bf16  cols = [fwd i,f,o,g | bwd i,f,o,g]
    # b_ref   : (1, 8H)     f32   combined gate bias (b_ih + b_hh)
    # whh_ref : (2H, 8H)    bf16  block-diagonal recurrent weights
    # wlin_ref: (2H, Cp)    bf16  classifier weights (lane-padded)
    # blin_ref: (1, Cp)     f32
    # out_ref : (Bt, Cp)    f32
    # gx_ref  : (T*Bt, 8H)  bf16  scratch: hoisted input projection
    T, Bt, E = x_ref.shape
    H8 = wih_ref.shape[1]
    H4 = H8 // 2
    H = H4 // 4
    H3 = 3 * H

    # ---- Hoisted input projection: ONE matmul for every timestep and both
    # directions (no serial dependency), bf16 operands, f32 accumulate.
    # TODO(synk): for long T, chunk this over time (emit_pipeline) so gx does
    # not have to be fully VMEM-resident on v7x's 64 MiB.
    x2d = x_ref[...].reshape(T * Bt, E)
    gx_ref[...] = (jnp.dot(x2d, wih_ref[...], preferred_element_type=jnp.float32)
                   + b_ref[...]).astype(gx_ref.dtype)

    whh = whh_ref[...]
    lens = lens_ref[...]                                  # (Bt, 1) int32
    z = jnp.zeros((Bt, H), jnp.float32)

    # ---- Merged fwd+bwd recurrence: one (Bt,2H)@(2H,8H) MXU matmul per step.
    # Forward consumes x_s (gx rows s*Bt), backward consumes x_{T-1-s}
    # (backward gate columns of gx rows (T-1-s)*Bt).
    def step(s, carry):
        h_f, h_b, c_f, c_b = carry
        h_cat = jnp.concatenate([h_f, h_b], axis=1).astype(whh.dtype)  # (Bt, 2H)
        rec = jnp.dot(h_cat, whh, preferred_element_type=jnp.float32)  # (Bt, 8H)

        row_f = pl.ds(pl.multiple_of(s * Bt, Bt), Bt)
        row_b = pl.ds(pl.multiple_of((T - 1 - s) * Bt, Bt), Bt)
        gx_f = gx_ref[row_f, :]                                        # (Bt, 8H)
        gx_b = gx_ref[row_b, :]
        g_f = gx_f[:, :H4].astype(jnp.float32) + rec[:, :H4]           # (Bt, 4H)
        g_b = gx_b[:, H4:].astype(jnp.float32) + rec[:, H4:]

        s_f = jax.nn.sigmoid(g_f[:, :H3])      # [i_f, f_f, o_f]
        s_b = jax.nn.sigmoid(g_b[:, :H3])      # [i_b, f_b, o_b]
        t_f = jnp.tanh(g_f[:, H3:])            # g_f
        t_b = jnp.tanh(g_b[:, H3:])            # g_b

        c_f_new = s_f[:, H:2 * H] * c_f + s_f[:, :H] * t_f
        c_b_new = s_b[:, H:2 * H] * c_b + s_b[:, :H] * t_b
        h_f_new = s_f[:, 2 * H:] * jnp.tanh(c_f_new)
        h_b_new = s_b[:, 2 * H:] * jnp.tanh(c_b_new)

        m_f = lens > s                     # fwd updates while s < len
        m_b = lens > (T - 1 - s)           # bwd updates while (T-1-s) < len
        return (jnp.where(m_f, h_f_new, h_f), jnp.where(m_b, h_b_new, h_b),
                jnp.where(m_f, c_f_new, c_f), jnp.where(m_b, c_b_new, c_b))

    unroll = True if T <= 16 else 8
    h_f, h_b, _, _ = lax.fori_loop(0, T, step, (z, z, z, z), unroll=unroll)

    # final state == concat(hidden[-2], hidden[-1]); classifier matmul fused.
    h_fin = jnp.concatenate([h_f, h_b], axis=1).astype(wlin_ref.dtype)  # (Bt, 2H)
    out_ref[...] = (jnp.dot(h_fin, wlin_ref[...], preferred_element_type=jnp.float32)
                    + blin_ref[...])


def bi_lstm_forward(tokens, lengths, params, block_b=8):
    """Glue (embedding gather, length sort, weight repacking) in JAX; the
    BiLSTM recurrence + classifier run in the Pallas kernel.

    tokens : (T, B) int32   (== PyTorch input[0])
    lengths: (B,)   int32   (== x_lenghts[0])
    returns (lin_output (B, C), perm_index (B,))
    """
    emb = jnp.take(params["embedding"], tokens, axis=0)            # (T, B, E)

    # lengths.sort(0, descending=True) -> perm_index, then permute batch.
    perm_index = jnp.argsort(-lengths, stable=True)
    x_bte = jnp.transpose(emb, (1, 0, 2))[perm_index]              # (B, T, E)
    lens_sorted = lengths[perm_index].astype(jnp.int32)
    x_tbe = jnp.transpose(x_bte, (1, 0, 2))                        # (T, B, E)

    T, B, E = x_tbe.shape
    H = params["whh_f"].shape[1]
    C = params["wlin"].shape[0]
    C_PAD = max(128, -(-C // 128) * 128)
    B_PAD = -(-B // block_b) * block_b                             # sublane-dense batch

    f32, bf16 = jnp.float32, jnp.bfloat16

    # Batch padding: pad rows get length 0 and their outputs are sliced off.
    x_p = jnp.zeros((T, B_PAD, E), bf16).at[:, :B, :].set(x_tbe.astype(bf16))
    lens_p = jnp.zeros((B_PAD, 1), jnp.int32).at[:B, 0].set(lens_sorted)

    def reorder(w):
        # PyTorch gate order [i, f, g, o] along axis 0 -> kernel order [i, f, o, g]
        i, f, g, o = (w[k * H:(k + 1) * H] for k in range(4))
        return jnp.concatenate([i, f, o, g], axis=0)

    # (E, 8H): fwd gate block (cols 0:4H) and bwd gate block (cols 4H:8H), both
    # keyed to x_t — no duplicated/reversed input, no structural zero columns.
    wih_all = jnp.concatenate([reorder(params["wih_f"].astype(f32)).T,
                               reorder(params["wih_b"].astype(f32)).T],
                              axis=1).astype(bf16)                 # (E, 8H)
    whh_c = jnp.zeros((2 * H, 8 * H), f32)
    whh_c = whh_c.at[:H, :4 * H].set(reorder(params["whh_f"].astype(f32)).T)
    whh_c = whh_c.at[H:, 4 * H:].set(reorder(params["whh_b"].astype(f32)).T)
    whh_c = whh_c.astype(bf16)                                     # (2H, 8H)
    b_c = jnp.concatenate([
        reorder((params["bih_f"] + params["bhh_f"]).astype(f32)),
        reorder((params["bih_b"] + params["bhh_b"]).astype(f32)),
    ]).reshape(1, 8 * H)                                           # (1, 8H) f32

    wlin_p = jnp.zeros((2 * H, C_PAD), f32).at[:, :C].set(
        params["wlin"].T.astype(f32)).astype(bf16)
    blin_p = jnp.zeros((1, C_PAD), f32).at[:, :C].set(params["blin"].astype(f32))

    nb = B_PAD // block_b
    grid_spec = pltpu.PrefetchScalarGridSpec(
        num_scalar_prefetch=0,
        grid=(nb,),                                                 # batch tiles
        in_specs=[
            pl.BlockSpec((T, block_b, E), lambda i: (0, i, 0)),     # x
            pl.BlockSpec((block_b, 1), lambda i: (i, 0)),           # lens
            pl.BlockSpec((E, 8 * H), lambda i: (0, 0)),             # W_ih
            pl.BlockSpec((1, 8 * H), lambda i: (0, 0)),             # bias
            pl.BlockSpec((2 * H, 8 * H), lambda i: (0, 0)),         # W_hh
            pl.BlockSpec((2 * H, C_PAD), lambda i: (0, 0)),         # W_lin
            pl.BlockSpec((1, C_PAD), lambda i: (0, 0)),             # b_lin
        ],
        out_specs=pl.BlockSpec((block_b, C_PAD), lambda i: (i, 0)),
        scratch_shapes=[pltpu.VMEM((T * block_b, 8 * H), bf16)],    # gx
    )

    out_pad = pl.pallas_call(
        bilstm_kernel,
        out_shape=jax.ShapeDtypeStruct((B_PAD, C_PAD), f32),
        grid_spec=grid_spec,
        compiler_params=pltpu.CompilerParams(
            dimension_semantics=("parallel",),        # batch tiles -> 2 TCs on v7x
            vmem_limit_bytes=32 * 1024 * 1024),
    )(x_p, lens_p, wih_all, b_c, whh_c, wlin_p, blin_p)

    return out_pad[:B, :C], perm_index


def make_params(key, vocab, E, H, C):
    ks = jax.random.split(key, 12)
    k = 1.0 / np.sqrt(H)
    u = lambda kk, shape, s: jax.random.uniform(kk, shape, jnp.float32, -s, s)
    return {
        "embedding": u(ks[0], (vocab, E), np.sqrt(3.0 / E)),
        "wih_f": u(ks[1], (4 * H, E), k), "whh_f": u(ks[2], (4 * H, H), k),
        "bih_f": u(ks[3], (4 * H,), k),  "bhh_f": u(ks[4], (4 * H,), k),
        "wih_b": u(ks[5], (4 * H, E), k), "whh_b": u(ks[6], (4 * H, H), k),
        "bih_b": u(ks[7], (4 * H,), k),  "bhh_b": u(ks[8], (4 * H,), k),
        "wlin": u(ks[9], (C, 2 * H), 1.0 / np.sqrt(2 * H)),
        "blin": u(ks[10], (C,), 1.0 / np.sqrt(2 * H)),
    }


def reference_forward(tokens, lengths, p):
    """Pure-JAX f32 replica of the PyTorch forward (packed BiLSTM via masking)."""
    emb = p["embedding"][tokens]                                   # (T, B, E)
    perm = jnp.argsort(-lengths, stable=True)
    x = jnp.transpose(emb, (1, 0, 2))[perm]                        # (B, T, E)
    lens = lengths[perm]
    B, T, _ = x.shape
    H = p["whh_f"].shape[1]

    def run(wih, whh, b, reverse):
        h = jnp.zeros((B, H), jnp.float32)
        c = jnp.zeros((B, H), jnp.float32)
        ts = range(T - 1, -1, -1) if reverse else range(T)
        for t in ts:
            g = x[:, t, :] @ wih.T + h @ whh.T + b
            i = jax.nn.sigmoid(g[:, :H])
            f = jax.nn.sigmoid(g[:, H:2 * H])
            gg = jnp.tanh(g[:, 2 * H:3 * H])
            o = jax.nn.sigmoid(g[:, 3 * H:])
            c_new = f * c + i * gg
            h_new = o * jnp.tanh(c_new)
            m = (t < lens)[:, None]
            h = jnp.where(m, h_new, h)
            c = jnp.where(m, c_new, c)
        return h

    hf = run(p["wih_f"], p["whh_f"], p["bih_f"] + p["bhh_f"], False)
    hb = run(p["wih_b"], p["whh_b"], p["bih_b"] + p["bhh_b"], True)
    final = jnp.concatenate([hf, hb], axis=1)
    return final @ p["wlin"].T + p["blin"], perm


if __name__ == "__main__":
    VOCAB, E, H, C = 20, 32, 32, 5       # hidden_size=32, bidirectional=True
    T, B = 8, 4                          # seq=8, batch=4

    key = jax.random.PRNGKey(0)
    kp, kt, kl = jax.random.split(key, 3)
    params = make_params(kp, VOCAB, E, H, C)
    tokens = jax.random.randint(kt, (T, B), 0, VOCAB, dtype=jnp.int32)
    lengths = jnp.array([8, 5, 7, 3], dtype=jnp.int32)           # x_lenghts[0]

    out, perm_index = bi_lstm_forward(tokens, lengths, params)
    out = jax.block_until_ready(out)

    ref_out, ref_perm = reference_forward(tokens, lengths, params)
    # bf16 MXU operands accumulate small per-step rounding vs the f32 reference
    np.testing.assert_allclose(np.asarray(out), np.asarray(ref_out),
                               rtol=2e-2, atol=2e-2)
    assert np.array_equal(np.asarray(perm_index), np.asarray(ref_perm))

    # TODO(synk): upos/umed/uad/qk feature-concat branches are off by default
    # in this config and therefore not exercised.
    print("KERNEL_OK")
</pallas_src>

<mosaic_0001>
module attributes {stable_mosaic.version = 11 : i64} {
  func.func @bilstm_kernel(%arg0: i32, %arg1: memref<8x8x32xbf16, #tpu.memory_space<vmem>>, %arg2: memref<8x1xi32, #tpu.memory_space<vmem>>, %arg3: memref<32x256xbf16, #tpu.memory_space<vmem>>, %arg4: memref<1x256xf32, #tpu.memory_space<vmem>>, %arg5: memref<64x256xbf16, #tpu.memory_space<vmem>>, %arg6: memref<64x128xbf16, #tpu.memory_space<vmem>>, %arg7: memref<1x128xf32, #tpu.memory_space<vmem>>, %arg8: memref<8x128xf32, #tpu.memory_space<vmem>>, %arg9: memref<64x256xbf16, #tpu.memory_space<vmem>>) attributes {dimension_semantics = [#tpu.dimension_semantics<parallel>], iteration_bounds = array<i64: 1>, scalar_prefetch = 0 : i64, scratch_operands = 1 : i64, tpu.core_type = #tpu.core_type<tc>, window_params = [{transform_indices = @transform_0, window_bounds = array<i64: 8, 8, 32>}, {transform_indices = @transform_1, window_bounds = array<i64: 8, 1>}, {pipeline_mode = #tpu.pipeline_mode<synchronous>, transform_indices = @transform_2, window_bounds = array<i64: 32, 256>}, {pipeline_mode = #tpu.pipeline_mode<synchronous>, transform_indices = @transform_3, window_bounds = array<i64: 1, 256>}, {pipeline_mode = #tpu.pipeline_mode<synchronous>, transform_indices = @transform_4, window_bounds = array<i64: 64, 256>}, {pipeline_mode = #tpu.pipeline_mode<synchronous>, transform_indices = @transform_5, window_bounds = array<i64: 64, 128>}, {pipeline_mode = #tpu.pipeline_mode<synchronous>, transform_indices = @transform_6, window_bounds = array<i64: 1, 128>}, {transform_indices = @transform_7, window_bounds = array<i64: 8, 128>}]} {
    %c0 = arith.constant 0 : index
    %c0_0 = arith.constant 0 : index
    %c0_1 = arith.constant 0 : index
    %0 = vector.load %arg1[%c0, %c0_0, %c0_1] : memref<8x8x32xbf16, #tpu.memory_space<vmem>>, vector<8x8x32xbf16>
    %1 = vector.shape_cast %0 : vector<8x8x32xbf16> to vector<64x32xbf16>
    %c0_2 = arith.constant 0 : index
    %c0_3 = arith.constant 0 : index
    %2 = vector.load %arg3[%c0_2, %c0_3] : memref<32x256xbf16, #tpu.memory_space<vmem>>, vector<32x256xbf16>
    %cst = arith.constant dense<0.000000e+00> : vector<64x256xf32>
    %3 = tpu.matmul %1, %2, %cst {dimension_numbers = #tpu.dot_dimension_numbers<[1], [0], [0], [1], [0, 0, 1, 1], [], []>} : vector<64x32xbf16>, vector<32x256xbf16>, vector<64x256xf32> -> vector<64x256xf32>
    %c0_4 = arith.constant 0 : index
    %c0_5 = arith.constant 0 : index
    %4 = vector.load %arg4[%c0_4, %c0_5] : memref<1x256xf32, #tpu.memory_space<vmem>>, vector<1x256xf32>
    %5 = vector.broadcast %4 : vector<1x256xf32> to vector<64x256xf32>
    %6 = arith.addf %3, %5 : vector<64x256xf32>
    %7 = arith.truncf %6 : vector<64x256xf32> to vector<64x256xbf16>
    %c0_6 = arith.constant 0 : index
    %c0_7 = arith.constant 0 : index
    %8 = vector.load %arg9[%c0_6, %c0_7] : memref<64x256xbf16, #tpu.memory_space<vmem>>, vector<64x256xbf16>
    tpu.vector_store %arg9[%c0_6, %c0_7], %7 {strides = array<i32>} : memref<64x256xbf16, #tpu.memory_space<vmem>>, vector<64x256xbf16>,
    %c0_8 = arith.constant 0 : index
    %c0_9 = arith.constant 0 : index
    %9 = vector.load %arg5[%c0_8, %c0_9] : memref<64x256xbf16, #tpu.memory_space<vmem>>, vector<64x256xbf16>
    %c0_10 = arith.constant 0 : index
    %c0_11 = arith.constant 0 : index
    %10 = vector.load %arg2[%c0_10, %c0_11] : memref<8x1xi32, #tpu.memory_space<vmem>>, vector<8x1xi32>
    %cst_12 = arith.constant 0.000000e+00 : f32
    %11 = vector.broadcast %cst_12 : f32 to vector<8x32xf32>
    %c0_i32 = arith.constant 0 : i32
    %12 = tpu.concatenate %11, %11 in 1 : vector<8x32xf32>, vector<8x32xf32> -> vector<8x64xf32>
    %13 = arith.truncf %12 : vector<8x64xf32> to vector<8x64xbf16>
    %cst_13 = arith.constant dense<0.000000e+00> : vector<8x256xf32>
    %14 = tpu.matmul %13, %9, %cst_13 {dimension_numbers = #tpu.dot_dimension_numbers<[1], [0], [0], [1], [0, 0, 1, 1], [], []>} : vector<8x64xbf16>, vector<64x256xbf16>, vector<8x256xf32> -> vector<8x256xf32>
    %c8_i32 = arith.constant 8 : i32
    %15 = arith.muli %c0_i32, %c8_i32 : i32
    %16 = tpu.assume_multiple %15, 8 : i32
    %c7_i32 = arith.constant 7 : i32
    %17 = arith.subi %c7_i32, %c0_i32 : i32
    %c8_i32_14 = arith.constant 8 : i32
    %18 = arith.muli %17, %c8_i32_14 : i32
    %19 = tpu.assume_multiple %18, 8 : i32
    %20 = arith.index_cast %16 : i32 to index
    %c0_15 = arith.constant 0 : index
    %21 = vector.load %arg9[%20, %c0_15] : memref<64x256xbf16, #tpu.memory_space<vmem>>, vector<8x256xbf16>
    %22 = arith.index_cast %19 : i32 to index
    %c0_16 = arith.constant 0 : index
    %23 = vector.load %arg9[%22, %c0_16] : memref<64x256xbf16, #tpu.memory_space<vmem>>, vector<8x256xbf16>
    %24 = vector.extract_strided_slice %21 {offsets = [0, 0], sizes = [8, 128], strides = [1, 1]} : vector<8x256xbf16> to vector<8x128xbf16>
    %25 = arith.extf %24 : vector<8x128xbf16> to vector<8x128xf32>
    %26 = vector.extract_strided_slice %14 {offsets = [0, 0], sizes = [8, 128], strides = [1, 1]} : vector<8x256xf32> to vector<8x128xf32>
    %27 = arith.addf %25, %26 : vector<8x128xf32>
    %28 = vector.extract_strided_slice %23 {offsets = [0, 128], sizes = [8, 128], strides = [1, 1]} : vector<8x256xbf16> to vector<8x128xbf16>
    %29 = arith.extf %28 : vector<8x128xbf16> to vector<8x128xf32>
    %30 = vector.extract_strided_slice %14 {offsets = [0, 128], sizes = [8, 128], strides = [1, 1]} : vector<8x256xf32> to vector<8x128xf32>
    %31 = arith.addf %29, %30 : vector<8x128xf32>
    %32 = vector.extract_strided_slice %27 {offsets = [0, 0], sizes = [8, 96], strides = [1, 1]} : vector<8x128xf32> to vector<8x96xf32>
    %33 = arith.negf %32 : vector<8x96xf32>
    %34 = math.exp %33 : vector<8x96xf32>
    %cst_17 = arith.constant 1.000000e+00 : f32
    %35 = vector.broadcast %cst_17 : f32 to vector<8x96xf32>
    %36 = arith.addf %35, %34 : vector<8x96xf32>
    %37 = arith.divf %35, %36 : vector<8x96xf32>
    %38 = vector.extract_strided_slice %31 {offsets = [0, 0], sizes = [8, 96], strides = [1, 1]} : vector<8x128xf32> to vector<8x96xf32>
    %39 = arith.negf %38 : vector<8x96xf32>
    %40 = math.exp %39 : vector<8x96xf32>
    %cst_18 = arith.constant 1.000000e+00 : f32
    %41 = vector.broadcast %cst_18 : f32 to vector<8x96xf32>
    %42 = arith.addf %41, %40 : vector<8x96xf32>
    %43 = arith.divf %41, %42 : vector<8x96xf32>
    %44 = vector.extract_strided_slice %27 {offsets = [0, 96], sizes = [8, 32], strides = [1, 1]} : vector<8x128xf32> to vector<8x32xf32>
    %45 = math.tanh %44 : vector<8x32xf32>
    %46 = vector.extract_strided_slice %31 {offsets = [0, 96], sizes = [8, 32], strides = [1, 1]} : vector<8x128xf32> to vector<8x32xf32>
    %47 = math.tanh %46 : vector<8x32xf32>
    %48 = vector.extract_strided_slice %37 {offsets = [0, 32], sizes = [8, 32], strides = [1, 1]} : vector<8x96xf32> to vector<8x32xf32>
    %49 = arith.mulf %48, %11 : vector<8x32xf32>
    %50 = vector.extract_strided_slice %37 {offsets = [0, 0], sizes = [8, 32], strides = [1, 1]} : vector<8x96xf32> to vector<8x32xf32>
    %51 = arith.mulf %50, %45 : vector<8x32xf32>
    %52 = arith.addf %49, %51 : vector<8x32xf32>
    %53 = vector.extract_strided_slice %43 {offsets = [0, 32], sizes = [8, 32], strides = [1, 1]} : vector<8x96xf32> to vector<8x32xf32>
    %54 = arith.mulf %53, %11 : vector<8x32xf32>
    %55 = vector.extract_strided_slice %43 {offsets = [0, 0], sizes = [8, 32], strides = [1, 1]} : vector<8x96xf32> to vector<8x32xf32>
    %56 = arith.mulf %55, %47 : vector<8x32xf32>
    %57 = arith.addf %54, %56 : vector<8x32xf32>
    %58 = vector.extract_strided_slice %37 {offsets = [0, 64], sizes = [8, 32], strides = [1, 1]} : vector<8x96xf32> to vector<8x32xf32>
    %59 = math.tanh %52 : vector<8x32xf32>
    %60 = arith.mulf %58, %59 : vector<8x32xf32>
    %61 = vector.extract_strided_slice %43 {offsets = [0, 64], sizes = [8, 32], strides = [1, 1]} : vector<8x96xf32> to vector<8x32xf32>
    %62 = math.tanh %57 : vector<8x32xf32>
    %63 = arith.mulf %61, %62 : vector<8x32xf32>
    %64 = vector.broadcast %c0_i32 : i32 to vector<8x1xi32>
    %65 = arith.cmpi sgt, %10, %64 : vector<8x1xi32>
    %c7_i32_19 = arith.constant 7 : i32
    %66 = arith.subi %c7_i32_19, %c0_i32 : i32
    %67 = vector.broadcast %66 : i32 to vector<8x1xi32>
    %68 = arith.cmpi sgt, %10, %67 : vector<8x1xi32>
    %69 = vector.shape_cast %65 : vector<8x1xi1> to vector<8x1xi1>
    %70 = vector.broadcast %69 : vector<8x1xi1> to vector<8x32xi1>
    %71 = arith.select %70, %60, %11 : vector<8x32xi1>, vector<8x32xf32>
    %72 = vector.shape_cast %68 : vector<8x1xi1> to vector<8x1xi1>
    %73 = vector.broadcast %72 : vector<8x1xi1> to vector<8x32xi1>
    %74 = arith.select %73, %63, %11 : vector<8x32xi1>, vector<8x32xf32>
    %75 = vector.shape_cast %65 : vector<8x1xi1> to vector<8x1xi1>
    %76 = vector.broadcast %75 : vector<8x1xi1> to vector<8x32xi1>
    %77 = arith.select %76, %52, %11 : vector<8x32xi1>, vector<8x32xf32>
    %78 = vector.shape_cast %68 : vector<8x1xi1> to vector<8x1xi1>
    %79 = vector.broadcast %78 : vector<8x1xi1> to vector<8x32xi1>
    %80 = arith.select %79, %57, %11 : vector<8x32xi1>, vector<8x32xf32>
    %c1_i32 = arith.constant 1 : i32
    %81 = tpu.concatenate %71, %74 in 1 : vector<8x32xf32>, vector<8x32xf32> -> vector<8x64xf32>
    %82 = arith.truncf %81 : vector<8x64xf32> to vector<8x64xbf16>
    %cst_20 = arith.constant dense<0.000000e+00> : vector<8x256xf32>
    %83 = tpu.matmul %82, %9, %cst_20 {dimension_numbers = #tpu.dot_dimension_numbers<[1], [0], [0], [1], [0, 0, 1, 1], [], []>} : vector<8x64xbf16>, vector<64x256xbf16>, vector<8x256xf32> -> vector<8x256xf32>
    %c8_i32_21 = arith.constant 8 : i32
    %84 = arith.muli %c1_i32, %c8_i32_21 : i32
    %85 = tpu.assume_multiple %84, 8 : i32
    %c7_i32_22 = arith.constant 7 : i32
    %86 = arith.subi %c7_i32_22, %c1_i32 : i32
    %c8_i32_23 = arith.constant 8 : i32
    %87 = arith.muli %86, %c8_i32_23 : i32
    %88 = tpu.assume_multiple %87, 8 : i32
    %89 = arith.index_cast %85 : i32 to index
    %c0_24 = arith.constant 0 : index
    %90 = vector.load %arg9[%89, %c0_24] : memref<64x256xbf16, #tpu.memory_space<vmem>>, vector<8x256xbf16>
    %91 = arith.index_cast %88 : i32 to index
    %c0_25 = arith.constant 0 : index
    %92 = vector.load %arg9[%91, %c0_25] : memref<64x256xbf16, #tpu.memory_space<vmem>>, vector<8x256xbf16>
    %93 = vector.extract_strided_slice %90 {offsets = [0, 0], sizes = [8, 128], strides = [1, 1]} : vector<8x256xbf16> to vector<8x128xbf16>
    %94 = arith.extf %93 : vector<8x128xbf16> to vector<8x128xf32>
    %95 = vector.extract_strided_slice %83 {offsets = [0, 0], sizes = [8, 128], strides = [1, 1]} : vector<8x256xf32> to vector<8x128xf32>
    %96 = arith.addf %94, %95 : vector<8x128xf32>
    %97 = vector.extract_strided_slice %92 {offsets = [0, 128], sizes = [8, 128], strides = [1, 1]} : vector<8x256xbf16> to vector<8x128xbf16>
    %98 = arith.extf %97 : vector<8x128xbf16> to vector<8x128xf32>
    %99 = vector.extract_strided_slice %83 {offsets = [0, 128], sizes = [8, 128], strides = [1, 1]} : vector<8x256xf32> to vector<8x128xf32>
    %100 = arith.addf %98, %99 : vector<8x128xf32>
    %101 = vector.extract_strided_slice %96 {offsets = [0, 0], sizes = [8, 96], strides = [1, 1]} : vector<8x128xf32> to vector<8x96xf32>
    %102 = arith.negf %101 : vector<8x96xf32>
    %103 = math.exp %102 : vector<8x96xf32>
    %cst_26 = arith.constant 1.000000e+00 : f32
    %104 = vector.broadcast %cst_26 : f32 to vector<8x96xf32>
    %105 = arith.addf %104, %103 : vector<8x96xf32>
    %106 = arith.divf %104, %105 : vector<8x96xf32>
    %107 = vector.extract_strided_slice %100 {offsets = [0, 0], sizes = [8, 96], strides = [1, 1]} : vector<8x128xf32> to vector<8x96xf32>
    %108 = arith.negf %107 : vector<8x96xf32>
    %109 = math.exp %108 : vector<8x96xf32>
    %cst_27 = arith.constant 1.000000e+00 : f32
    %110 = vector.broadcast %cst_27 : f32 to vector<8x96xf32>
    %111 = arith.addf %110, %109 : vector<8x96xf32>
    %112 = arith.divf %110, %111 : vector<8x96xf32>
    %113 = vector.extract_strided_slice %96 {offsets = [0, 96], sizes = [8, 32], strides = [1, 1]} : vector<8x128xf32> to vector<8x32xf32>
    %114 = math.tanh %113 : vector<8x32xf32>
    %115 = vector.extract_strided_slice %100 {offsets = [0, 96], sizes = [8, 32], strides = [1, 1]} : vector<8x128xf32> to vector<8x32xf32>
    %116 = math.tanh %115 : vector<8x32xf32>
    %117 = vector.extract_strided_slice %106 {offsets = [0, 32], sizes = [8, 32], strides = [1, 1]} : vector<8x96xf32> to vector<8x32xf32>
    %118 = arith.mulf %117, %77 : vector<8x32xf32>
    %119 = vector.extract_strided_slice %106 {offsets = [0, 0], sizes = [8, 32], strides = [1, 1]} : vector<8x96xf32> to vector<8x32xf32>
    %120 = arith.mulf %119, %114 : vector<8x32xf32>
    %121 = arith.addf %118, %120 : vector<8x32xf32>
    %122 = vector.extract_strided_slice %112 {offsets = [0, 32], sizes = [8, 32], strides = [1, 1]} : vector<8x96xf32> to vector<8x32xf32>
    %123 = arith.mulf %122, %80 : vector<8x32xf32>
    %124 = vector.extract_strided_slice %112 {offsets = [0, 0], sizes = [8, 32], strides = [1, 1]} : vector<8x96xf32> to vector<8x32xf32>
    %125 = arith.mulf %124, %116 : vector<8x32xf32>
    %126 = arith.addf %123, %125 : vector<8x32xf32>
    %127 = vector.extract_strided_slice %106 {offsets = [0, 64], sizes = [8, 32], strides = [1, 1]} : vector<8x96xf32> to vector<8x32xf32>
    %128 = math.tanh %121 : vector<8x32xf32>
    %129 = arith.mulf %127, %128 : vector<8x32xf32>
    %130 = vector.extract_strided_slice %112 {offsets = [0, 64], sizes = [8, 32], strides = [1, 1]} : vector<8x96xf32> to vector<8x32xf32>
    %131 = math.tanh %126 : vector<8x32xf32>
    %132 = arith.mulf %130, %131 : vector<8x32xf32>
    %133 = vector.broadcast %c1_i32 : i32 to vector<8x1xi32>
    %134 = arith.cmpi sgt, %10, %133 : vector<8x1xi32>
    %c7_i32_28 = arith.constant 7 : i32
    %135 = arith.subi %c7_i32_28, %c1_i32 : i32
    %136 = vector.broadcast %135 : i32 to vector<8x1xi32>
    %137 = arith.cmpi sgt, %10, %136 : vector<8x1xi32>
    %138 = vector.shape_cast %134 : vector<8x1xi1> to vector<8x1xi1>
    %139 = vector.broadcast %138 : vector<8x1xi1> to vector<8x32xi1>
    %140 = arith.select %139, %129, %71 : vector<8x32xi1>, vector<8x32xf32>
    %141 = vector.shape_cast %137 : vector<8x1xi1> to vector<8x1xi1>
    %142 = vector.broadcast %141 : vector<8x1xi1> to vector<8x32xi1>
    %143 = arith.select %142, %132, %74 : vector<8x32xi1>, vector<8x32xf32>
    %144 = vector.shape_cast %134 : vector<8x1xi1> to vector<8x1xi1>
    %145 = vector.broadcast %144 : vector<8x1xi1> to vector<8x32xi1>
    %146 = arith.select %145, %121, %77 : vector<8x32xi1>, vector<8x32xf32>
    %147 = vector.shape_cast %137 : vector<8x1xi1> to vector<8x1xi1>
    %148 = vector.broadcast %147 : vector<8x1xi1> to vector<8x32xi1>
    %149 = arith.select %148, %126, %80 : vector<8x32xi1>, vector<8x32xf32>
    %c2_i32 = arith.constant 2 : i32
    %150 = tpu.concatenate %140, %143 in 1 : vector<8x32xf32>, vector<8x32xf32> -> vector<8x64xf32>
    %151 = arith.truncf %150 : vector<8x64xf32> to vector<8x64xbf16>
    %cst_29 = arith.constant dense<0.000000e+00> : vector<8x256xf32>
    %152 = tpu.matmul %151, %9, %cst_29 {dimension_numbers = #tpu.dot_dimension_numbers<[1], [0], [0], [1], [0, 0, 1, 1], [], []>} : vector<8x64xbf16>, vector<64x256xbf16>, vector<8x256xf32> -> vector<8x256xf32>
    %c8_i32_30 = arith.constant 8 : i32
    %153 = arith.muli %c2_i32, %c8_i32_30 : i32
    %154 = tpu.assume_multiple %153, 8 : i32
    %c7_i32_31 = arith.constant 7 : i32
    %155 = arith.subi %c7_i32_31, %c2_i32 : i32
    %c8_i32_32 = arith.constant 8 : i32
    %156 = arith.muli %155, %c8_i32_32 : i32
    %157 = tpu.assume_multiple %156, 8 : i32
    %158 = arith.index_cast %154 : i32 to index
    %c0_33 = arith.constant 0 : index
    %159 = vector.load %arg9[%158, %c0_33] : memref<64x256xbf16, #tpu.memory_space<vmem>>, vector<8x256xbf16>
    %160 = arith.index_cast %157 : i32 to index
    %c0_34 = arith.constant 0 : index
    %161 = vector.load %arg9[%160, %c0_34] : memref<64x256xbf16, #tpu.memory_space<vmem>>, vector<8x256xbf16>
    %162 = vector.extract_strided_slice %159 {offsets = [0, 0], sizes = [8, 128], strides = [1, 1]} : vector<8x256xbf16> to vector<8x128xbf16>
    %163 = arith.extf %162 : vector<8x128xbf16> to vector<8x128xf32>
    %164 = vector.extract_strided_slice %152 {offsets = [0, 0], sizes = [8, 128], strides = [1, 1]} : vector<8x256xf32> to vector<8x128xf32>
    %165 = arith.addf %163, %164 : vector<8x128xf32>
    %166 = vector.extract_strided_slice %161 {offsets = [0, 128], sizes = [8, 128], strides = [1, 1]} : vector<8x256xbf16> to vector<8x128xbf16>
    %167 = arith.extf %166 : vector<8x128xbf16> to vector<8x128xf32>
    %168 = vector.extract_strided_slice %152 {offsets = [0, 128], sizes = [8, 128], strides = [1, 1]} : vector<8x256xf32> to vector<8x128xf32>
    %169 = arith.addf %167, %168 : vector<8x128xf32>
    %170 = vector.extract_strided_slice %165 {offsets = [0, 0], sizes = [8, 96], strides = [1, 1]} : vector<8x128xf32> to vector<8x96xf32>
    %171 = arith.negf %170 : vector<8x96xf32>
    %172 = math.exp %171 : vector<8x96xf32>
    %cst_35 = arith.constant 1.000000e+00 : f32
    %173 = vector.broadcast %cst_35 : f32 to vector<8x96xf32>
    %174 = arith.addf %173, %172 : vector<8x96xf32>
    %175 = arith.divf %173, %174 : vector<8x96xf32>
    %176 = vector.extract_strided_slice %169 {offsets = [0, 0], sizes = [8, 96], strides = [1, 1]} : vector<8x128xf32> to vector<8x96xf32>
    %177 = arith.negf %176 : vector<8x96xf32>
    %178 = math.exp %177 : vector<8x96xf32>
    %cst_36 = arith.constant 1.000000e+00 : f32
    %179 = vector.broadcast %cst_36 : f32 to vector<8x96xf32>
    %180 = arith.addf %179, %178 : vector<8x96xf32>
    %181 = arith.divf %179, %180 : vector<8x96xf32>
    %182 = vector.extract_strided_slice %165 {offsets = [0, 96], sizes = [8, 32], strides = [1, 1]} : vector<8x128xf32> to vector<8x32xf32>
    %183 = math.tanh %182 : vector<8x32xf32>
    %184 = vector.extract_strided_slice %169 {offsets = [0, 96], sizes = [8, 32], strides = [1, 1]} : vector<8x128xf32> to vector<8x32xf32>
    %185 = math.tanh %184 : vector<8x32xf32>
    %186 = vector.extract_strided_slice %175 {offsets = [0, 32], sizes = [8, 32], strides = [1, 1]} : vector<8x96xf32> to vector<8x32xf32>
    %187 = arith.mulf %186, %146 : vector<8x32xf32>
    %188 = vector.extract_strided_slice %175 {offsets = [0, 0], sizes = [8, 32], strides = [1, 1]} : vector<8x96xf32> to vector<8x32xf32>
    %189 = arith.mulf %188, %183 : vector<8x32xf32>
    %190 = arith.addf %187, %189 : vector<8x32xf32>
    %191 = vector.extract_strided_slice %181 {offsets = [0, 32], sizes = [8, 32], strides = [1, 1]} : vector<8x96xf32> to vector<8x32xf32>
    %192 = arith.mulf %191, %149 : vector<8x32xf32>
    %193 = vector.extract_strided_slice %181 {offsets = [0, 0], sizes = [8, 32], strides = [1, 1]} : vector<8x96xf32> to vector<8x32xf32>
    %194 = arith.mulf %193, %185 : vector<8x32xf32>
    %195 = arith.addf %192, %194 : vector<8x32xf32>
    %196 = vector.extract_strided_slice %175 {offsets = [0, 64], sizes = [8, 32], strides = [1, 1]} : vector<8x96xf32> to vector<8x32xf32>
    %197 = math.tanh %190 : vector<8x32xf32>
    %198 = arith.mulf %196, %197 : vector<8x32xf32>
    %199 = vector.extract_strided_slice %181 {offsets = [0, 64], sizes = [8, 32], strides = [1, 1]} : vector<8x96xf32> to vector<8x32xf32>
    %200 = math.tanh %195 : vector<8x32xf32>
    %201 = arith.mulf %199, %200 : vector<8x32xf32>
    %202 = vector.broadcast %c2_i32 : i32 to vector<8x1xi32>
    %203 = arith.cmpi sgt, %10, %202 : vector<8x1xi32>
    %c7_i32_37 = arith.constant 7 : i32
    %204 = arith.subi %c7_i32_37, %c2_i32 : i32
    %205 = vector.broadcast %204 : i32 to vector<8x1xi32>
    %206 = arith.cmpi sgt, %10, %205 : vector<8x1xi32>
    %207 = vector.shape_cast %203 : vector<8x1xi1> to vector<8x1xi1>
    %208 = vector.broadcast %207 : vector<8x1xi1> to vector<8x32xi1>
    %209 = arith.select %208, %198, %140 : vector<8x32xi1>, vector<8x32xf32>
    %210 = vector.shape_cast %206 : vector<8x1xi1> to vector<8x1xi1>
    %211 = vector.broadcast %210 : vector<8x1xi1> to vector<8x32xi1>
    %212 = arith.select %211, %201, %143 : vector<8x32xi1>, vector<8x32xf32>
    %213 = vector.shape_cast %203 : vector<8x1xi1> to vector<8x1xi1>
    %214 = vector.broadcast %213 : vector<8x1xi1> to vector<8x32xi1>
    %215 = arith.select %214, %190, %146 : vector<8x32xi1>, vector<8x32xf32>
    %216 = vector.shape_cast %206 : vector<8x1xi1> to vector<8x1xi1>
    %217 = vector.broadcast %216 : vector<8x1xi1> to vector<8x32xi1>
    %218 = arith.select %217, %195, %149 : vector<8x32xi1>, vector<8x32xf32>
    %c3_i32 = arith.constant 3 : i32
    %219 = tpu.concatenate %209, %212 in 1 : vector<8x32xf32>, vector<8x32xf32> -> vector<8x64xf32>
    %220 = arith.truncf %219 : vector<8x64xf32> to vector<8x64xbf16>
    %cst_38 = arith.constant dense<0.000000e+00> : vector<8x256xf32>
    %221 = tpu.matmul %220, %9, %cst_38 {dimension_numbers = #tpu.dot_dimension_numbers<[1], [0], [0], [1], [0, 0, 1, 1], [], []>} : vector<8x64xbf16>, vector<64x256xbf16>, vector<8x256xf32> -> vector<8x256xf32>
    %c8_i32_39 = arith.constant 8 : i32
    %222 = arith.muli %c3_i32, %c8_i32_39 : i32
    %223 = tpu.assume_multiple %222, 8 : i32
    %c7_i32_40 = arith.constant 7 : i32
    %224 = arith.subi %c7_i32_40, %c3_i32 : i32
    %c8_i32_41 = arith.constant 8 : i32
    %225 = arith.muli %224, %c8_i32_41 : i32
    %226 = tpu.assume_multiple %225, 8 : i32
    %227 = arith.index_cast %223 : i32 to index
    %c0_42 = arith.constant 0 : index
    %228 = vector.load %arg9[%227, %c0_42] : memref<64x256xbf16, #tpu.memory_space<vmem>>, vector<8x256xbf16>
    %229 = arith.index_cast %226 : i32 to index
    %c0_43 = arith.constant 0 : index
    %230 = vector.load %arg9[%229, %c0_43] : memref<64x256xbf16, #tpu.memory_space<vmem>>, vector<8x256xbf16>
    %231 = vector.extract_strided_slice %228 {offsets = [0, 0], sizes = [8, 128], strides = [1, 1]} : vector<8x256xbf16> to vector<8x128xbf16>
    %232 = arith.extf %231 : vector<8x128xbf16> to vector<8x128xf32>
    %233 = vector.extract_strided_slice %221 {offsets = [0, 0], sizes = [8, 128], strides = [1, 1]} : vector<8x256xf32> to vector<8x128xf32>
    %234 = arith.addf %232, %233 : vector<8x128xf32>
    %235 = vector.extract_strided_slice %230 {offsets = [0, 128], sizes = [8, 128], strides = [1, 1]} : vector<8x256xbf16> to vector<8x128xbf16>
    %236 = arith.extf %235 : vector<8x128xbf16> to vector<8x128xf32>
    %237 = vector.extract_strided_slice %221 {offsets = [0, 128], sizes = [8, 128], strides = [1, 1]} : vector<8x256xf32> to vector<8x128xf32>
    %238 = arith.addf %236, %237 : vector<8x128xf32>
    %239 = vector.extract_strided_slice %234 {offsets = [0, 0], sizes = [8, 96], strides = [1, 1]} : vector<8x128xf32> to vector<8x96xf32>
    %240 = arith.negf %239 : vector<8x96xf32>
    %241 = math.exp %240 : vector<8x96xf32>
    %cst_44 = arith.constant 1.000000e+00 : f32
    %242 = vector.broadcast %cst_44 : f32 to vector<8x96xf32>
    %243 = arith.addf %242, %241 : vector<8x96xf32>
    %244 = arith.divf %242, %243 : vector<8x96xf32>
    %245 = vector.extract_strided_slice %238 {offsets = [0, 0], sizes = [8, 96], strides = [1, 1]} : vector<8x128xf32> to vector<8x96xf32>
    %246 = arith.negf %245 : vector<8x96xf32>
    %247 = math.exp %246 : vector<8x96xf32>
    %cst_45 = arith.constant 1.000000e+00 : f32
    %248 = vector.broadcast %cst_45 : f32 to vector<8x96xf32>
    %249 = arith.addf %248, %247 : vector<8x96xf32>
    %250 = arith.divf %248, %249 : vector<8x96xf32>
    %251 = vector.extract_strided_slice %234 {offsets = [0, 96], sizes = [8, 32], strides = [1, 1]} : vector<8x128xf32> to vector<8x32xf32>
    %252 = math.tanh %251 : vector<8x32xf32>
    %253 = vector.extract_strided_slice %238 {offsets = [0, 96], sizes = [8, 32], strides = [1, 1]} : vector<8x128xf32> to vector<8x32xf32>
    %254 = math.tanh %253 : vector<8x32xf32>
    %255 = vector.extract_strided_slice %244 {offsets = [0, 32], sizes = [8, 32], strides = [1, 1]} : vector<8x96xf32> to vector<8x32xf32>
    %256 = arith.mulf %255, %215 : vector<8x32xf32>
    %257 = vector.extract_strided_slice %244 {offsets = [0, 0], sizes = [8, 32], strides = [1, 1]} : vector<8x96xf32> to vector<8x32xf32>
    %258 = arith.mulf %257, %252 : vector<8x32xf32>
    %259 = arith.addf %256, %258 : vector<8x32xf32>
    %260 = vector.extract_strided_slice %250 {offsets = [0, 32], sizes = [8, 32], strides = [1, 1]} : vector<8x96xf32> to vector<8x32xf32>
    %261 = arith.mulf %260, %218 : vector<8x32xf32>
    %262 = vector.extract_strided_slice %250 {offsets = [0, 0], sizes = [8, 32], strides = [1, 1]} : vector<8x96xf32> to vector<8x32xf32>
    %263 = arith.mulf %262, %254 : vector<8x32xf32>
    %264 = arith.addf %261, %263 : vector<8x32xf32>
    %265 = vector.extract_strided_slice %244 {offsets = [0, 64], sizes = [8, 32], strides = [1, 1]} : vector<8x96xf32> to vector<8x32xf32>
    %266 = math.tanh %259 : vector<8x32xf32>
    %267 = arith.mulf %265, %266 : vector<8x32xf32>
    %268 = vector.extract_strided_slice %250 {offsets = [0, 64], sizes = [8, 32], strides = [1, 1]} : vector<8x96xf32> to vector<8x32xf32>
    %269 = math.tanh %264 : vector<8x32xf32>
    %270 = arith.mulf %268, %269 : vector<8x32xf32>
    %271 = vector.broadcast %c3_i32 : i32 to vector<8x1xi32>
    %272 = arith.cmpi sgt, %10, %271 : vector<8x1xi32>
    %c7_i32_46 = arith.constant 7 : i32
    %273 = arith.subi %c7_i32_46, %c3_i32 : i32
    %274 = vector.broadcast %273 : i32 to vector<8x1xi32>
    %275 = arith.cmpi sgt, %10, %274 : vector<8x1xi32>
    %276 = vector.shape_cast %272 : vector<8x1xi1> to vector<8x1xi1>
    %277 = vector.broadcast %276 : vector<8x1xi1> to vector<8x32xi1>
    %278 = arith.select %277, %267, %209 : vector<8x32xi1>, vector<8x32xf32>
    %279 = vector.shape_cast %275 : vector<8x1xi1> to vector<8x1xi1>
    %280 = vector.broadcast %279 : vector<8x1xi1> to vector<8x32xi1>
    %281 = arith.select %280, %270, %212 : vector<8x32xi1>, vector<8x32xf32>
    %282 = vector.shape_cast %272 : vector<8x1xi1> to vector<8x1xi1>
    %283 = vector.broadcast %282 : vector<8x1xi1> to vector<8x32xi1>
    %284 = arith.select %283, %259, %215 : vector<8x32xi1>, vector<8x32xf32>
    %285 = vector.shape_cast %275 : vector<8x1xi1> to vector<8x1xi1>
    %286 = vector.broadcast %285 : vector<8x1xi1> to vector<8x32xi1>
    %287 = arith.select %286, %264, %218 : vector<8x32xi1>, vector<8x32xf32>
    %c4_i32 = arith.constant 4 : i32
    %288 = tpu.concatenate %278, %281 in 1 : vector<8x32xf32>, vector<8x32xf32> -> vector<8x64xf32>
    %289 = arith.truncf %288 : vector<8x64xf32> to vector<8x64xbf16>
    %cst_47 = arith.constant dense<0.000000e+00> : vector<8x256xf32>
    %290 = tpu.matmul %289, %9, %cst_47 {dimension_numbers = #tpu.dot_dimension_numbers<[1], [0], [0], [1], [0, 0, 1, 1], [], []>} : vector<8x64xbf16>, vector<64x256xbf16>, vector<8x256xf32> -> vector<8x256xf32>
    %c8_i32_48 = arith.constant 8 : i32
    %291 = arith.muli %c4_i32, %c8_i32_48 : i32
    %292 = tpu.assume_multiple %291, 8 : i32
    %c7_i32_49 = arith.constant 7 : i32
    %293 = arith.subi %c7_i32_49, %c4_i32 : i32
    %c8_i32_50 = arith.constant 8 : i32
    %294 = arith.muli %293, %c8_i32_50 : i32
    %295 = tpu.assume_multiple %294, 8 : i32
    %296 = arith.index_cast %292 : i32 to index
    %c0_51 = arith.constant 0 : index
    %297 = vector.load %arg9[%296, %c0_51] : memref<64x256xbf16, #tpu.memory_space<vmem>>, vector<8x256xbf16>
    %298 = arith.index_cast %295 : i32 to index
    %c0_52 = arith.constant 0 : index
    %299 = vector.load %arg9[%298, %c0_52] : memref<64x256xbf16, #tpu.memory_space<vmem>>, vector<8x256xbf16>
    %300 = vector.extract_strided_slice %297 {offsets = [0, 0], sizes = [8, 128], strides = [1, 1]} : vector<8x256xbf16> to vector<8x128xbf16>
    %301 = arith.extf %300 : vector<8x128xbf16> to vector<8x128xf32>
    %302 = vector.extract_strided_slice %290 {offsets = [0, 0], sizes = [8, 128], strides = [1, 1]} : vector<8x256xf32> to vector<8x128xf32>
    %303 = arith.addf %301, %302 : vector<8x128xf32>
    %304 = vector.extract_strided_slice %299 {offsets = [0, 128], sizes = [8, 128], strides = [1, 1]} : vector<8x256xbf16> to vector<8x128xbf16>
    %305 = arith.extf %304 : vector<8x128xbf16> to vector<8x128xf32>
    %306 = vector.extract_strided_slice %290 {offsets = [0, 128], sizes = [8, 128], strides = [1, 1]} : vector<8x256xf32> to vector<8x128xf32>
    %307 = arith.addf %305, %306 : vector<8x128xf32>
    %308 = vector.extract_strided_slice %303 {offsets = [0, 0], sizes = [8, 96], strides = [1, 1]} : vector<8x128xf32> to vector<8x96xf32>
    %309 = arith.negf %308 : vector<8x96xf32>
    %310 = math.exp %309 : vector<8x96xf32>
    %cst_53 = arith.constant 1.000000e+00 : f32
    %311 = vector.broadcast %cst_53 : f32 to vector<8x96xf32>
    %312 = arith.addf %311, %310 : vector<8x96xf32>
    %313 = arith.divf %311, %312 : vector<8x96xf32>
    %314 = vector.extract_strided_slice %307 {offsets = [0, 0], sizes = [8, 96], strides = [1, 1]} : vector<8x128xf32> to vector<8x96xf32>
    %315 = arith.negf %314 : vector<8x96xf32>
    %316 = math.exp %315 : vector<8x96xf32>
    %cst_54 = arith.constant 1.000000e+00 : f32
    %317 = vector.broadcast %cst_54 : f32 to vector<8x96xf32>
    %318 = arith.addf %317, %316 : vector<8x96xf32>
    %319 = arith.divf %317, %318 : vector<8x96xf32>
    %320 = vector.extract_strided_slice %303 {offsets = [0, 96], sizes = [8, 32], strides = [1, 1]} : vector<8x128xf32> to vector<8x32xf32>
    %321 = math.tanh %320 : vector<8x32xf32>
    %322 = vector.extract_strided_slice %307 {offsets = [0, 96], sizes = [8, 32], strides = [1, 1]} : vector<8x128xf32> to vector<8x32xf32>
    %323 = math.tanh %322 : vector<8x32xf32>
    %324 = vector.extract_strided_slice %313 {offsets = [0, 32], sizes = [8, 32], strides = [1, 1]} : vector<8x96xf32> to vector<8x32xf32>
    %325 = arith.mulf %324, %284 : vector<8x32xf32>
    %326 = vector.extract_strided_slice %313 {offsets = [0, 0], sizes = [8, 32], strides = [1, 1]} : vector<8x96xf32> to vector<8x32xf32>
    %327 = arith.mulf %326, %321 : vector<8x32xf32>
    %328 = arith.addf %325, %327 : vector<8x32xf32>
    %329 = vector.extract_strided_slice %319 {offsets = [0, 32], sizes = [8, 32], strides = [1, 1]} : vector<8x96xf32> to vector<8x32xf32>
    %330 = arith.mulf %329, %287 : vector<8x32xf32>
    %331 = vector.extract_strided_slice %319 {offsets = [0, 0], sizes = [8, 32], strides = [1, 1]} : vector<8x96xf32> to vector<8x32xf32>
    %332 = arith.mulf %331, %323 : vector<8x32xf32>
    %333 = arith.addf %330, %332 : vector<8x32xf32>
    %334 = vector.extract_strided_slice %313 {offsets = [0, 64], sizes = [8, 32], strides = [1, 1]} : vector<8x96xf32> to vector<8x32xf32>
    %335 = math.tanh %328 : vector<8x32xf32>
    %336 = arith.mulf %334, %335 : vector<8x32xf32>
    %337 = vector.extract_strided_slice %319 {offsets = [0, 64], sizes = [8, 32], strides = [1, 1]} : vector<8x96xf32> to vector<8x32xf32>
    %338 = math.tanh %333 : vector<8x32xf32>
    %339 = arith.mulf %337, %338 : vector<8x32xf32>
    %340 = vector.broadcast %c4_i32 : i32 to vector<8x1xi32>
    %341 = arith.cmpi sgt, %10, %340 : vector<8x1xi32>
    %c7_i32_55 = arith.constant 7 : i32
    %342 = arith.subi %c7_i32_55, %c4_i32 : i32
    %343 = vector.broadcast %342 : i32 to vector<8x1xi32>
    %344 = arith.cmpi sgt, %10, %343 : vector<8x1xi32>
    %345 = vector.shape_cast %341 : vector<8x1xi1> to vector<8x1xi1>
    %346 = vector.broadcast %345 : vector<8x1xi1> to vector<8x32xi1>
    %347 = arith.select %346, %336, %278 : vector<8x32xi1>, vector<8x32xf32>
    %348 = vector.shape_cast %344 : vector<8x1xi1> to vector<8x1xi1>
    %349 = vector.broadcast %348 : vector<8x1xi1> to vector<8x32xi1>
    %350 = arith.select %349, %339, %281 : vector<8x32xi1>, vector<8x32xf32>
    %351 = vector.shape_cast %341 : vector<8x1xi1> to vector<8x1xi1>
    %352 = vector.broadcast %351 : vector<8x1xi1> to vector<8x32xi1>
    %353 = arith.select %352, %328, %284 : vector<8x32xi1>, vector<8x32xf32>
    %354 = vector.shape_cast %344 : vector<8x1xi1> to vector<8x1xi1>
    %355 = vector.broadcast %354 : vector<8x1xi1> to vector<8x32xi1>
    %356 = arith.select %355, %333, %287 : vector<8x32xi1>, vector<8x32xf32>
    %c5_i32 = arith.constant 5 : i32
    %357 = tpu.concatenate %347, %350 in 1 : vector<8x32xf32>, vector<8x32xf32> -> vector<8x64xf32>
    %358 = arith.truncf %357 : vector<8x64xf32> to vector<8x64xbf16>
    %cst_56 = arith.constant dense<0.000000e+00> : vector<8x256xf32>
    %359 = tpu.matmul %358, %9, %cst_56 {dimension_numbers = #tpu.dot_dimension_numbers<[1], [0], [0], [1], [0, 0, 1, 1], [], []>} : vector<8x64xbf16>, vector<64x256xbf16>, vector<8x256xf32> -> vector<8x256xf32>
    %c8_i32_57 = arith.constant 8 : i32
    %360 = arith.muli %c5_i32, %c8_i32_57 : i32
    %361 = tpu.assume_multiple %360, 8 : i32
    %c7_i32_58 = arith.constant 7 : i32
    %362 = arith.subi %c7_i32_58, %c5_i32 : i32
    %c8_i32_59 = arith.constant 8 : i32
    %363 = arith.muli %362, %c8_i32_59 : i32
    %364 = tpu.assume_multiple %363, 8 : i32
    %365 = arith.index_cast %361 : i32 to index
    %c0_60 = arith.constant 0 : index
    %366 = vector.load %arg9[%365, %c0_60] : memref<64x256xbf16, #tpu.memory_space<vmem>>, vector<8x256xbf16>
    %367 = arith.index_cast %364 : i32 to index
    %c0_61 = arith.constant 0 : index
    %368 = vector.load %arg9[%367, %c0_61] : memref<64x256xbf16, #tpu.memory_space<vmem>>, vector<8x256xbf16>
    %369 = vector.extract_strided_slice %366 {offsets = [0, 0], sizes = [8, 128], strides = [1, 1]} : vector<8x256xbf16> to vector<8x128xbf16>
    %370 = arith.extf %369 : vector<8x128xbf16> to vector<8x128xf32>
    %371 = vector.extract_strided_slice %359 {offsets = [0, 0], sizes = [8, 128], strides = [1, 1]} : vector<8x256xf32> to vector<8x128xf32>
    %372 = arith.addf %370, %371 : vector<8x128xf32>
    %373 = vector.extract_strided_slice %368 {offsets = [0, 128], sizes = [8, 128], strides = [1, 1]} : vector<8x256xbf16> to vector<8x128xbf16>
    %374 = arith.extf %373 : vector<8x128xbf16> to vector<8x128xf32>
    %375 = vector.extract_strided_slice %359 {offsets = [0, 128], sizes = [8, 128], strides = [1, 1]} : vector<8x256xf32> to vector<8x128xf32>
    %376 = arith.addf %374, %375 : vector<8x128xf32>
    %377 = vector.extract_strided_slice %372 {offsets = [0, 0], sizes = [8, 96], strides = [1, 1]} : vector<8x128xf32> to vector<8x96xf32>
    %378 = arith.negf %377 : vector<8x96xf32>
    %379 = math.exp %378 : vector<8x96xf32>
    %cst_62 = arith.constant 1.000000e+00 : f32
    %380 = vector.broadcast %cst_62 : f32 to vector<8x96xf32>
    %381 = arith.addf %380, %379 : vector<8x96xf32>
    %382 = arith.divf %380, %381 : vector<8x96xf32>
    %383 = vector.extract_strided_slice %376 {offsets = [0, 0], sizes = [8, 96], strides = [1, 1]} : vector<8x128xf32> to vector<8x96xf32>
    %384 = arith.negf %383 : vector<8x96xf32>
    %385 = math.exp %384 : vector<8x96xf32>
    %cst_63 = arith.constant 1.000000e+00 : f32
    %386 = vector.broadcast %cst_63 : f32 to vector<8x96xf32>
    %387 = arith.addf %386, %385 : vector<8x96xf32>
    %388 = arith.divf %386, %387 : vector<8x96xf32>
    %389 = vector.extract_strided_slice %372 {offsets = [0, 96], sizes = [8, 32], strides = [1, 1]} : vector<8x128xf32> to vector<8x32xf32>
    %390 = math.tanh %389 : vector<8x32xf32>
    %391 = vector.extract_strided_slice %376 {offsets = [0, 96], sizes = [8, 32], strides = [1, 1]} : vector<8x128xf32> to vector<8x32xf32>
    %392 = math.tanh %391 : vector<8x32xf32>
    %393 = vector.extract_strided_slice %382 {offsets = [0, 32], sizes = [8, 32], strides = [1, 1]} : vector<8x96xf32> to vector<8x32xf32>
    %394 = arith.mulf %393, %353 : vector<8x32xf32>
    %395 = vector.extract_strided_slice %382 {offsets = [0, 0], sizes = [8, 32], strides = [1, 1]} : vector<8x96xf32> to vector<8x32xf32>
    %396 = arith.mulf %395, %390 : vector<8x32xf32>
    %397 = arith.addf %394, %396 : vector<8x32xf32>
    %398 = vector.extract_strided_slice %388 {offsets = [0, 32], sizes = [8, 32], strides = [1, 1]} : vector<8x96xf32> to vector<8x32xf32>
    %399 = arith.mulf %398, %356 : vector<8x32xf32>
    %400 = vector.extract_strided_slice %388 {offsets = [0, 0], sizes = [8, 32], strides = [1, 1]} : vector<8x96xf32> to vector<8x32xf32>
    %401 = arith.mulf %400, %392 : vector<8x32xf32>
    %402 = arith.addf %399, %401 : vector<8x32xf32>
    %403 = vector.extract_strided_slice %382 {offsets = [0, 64], sizes = [8, 32], strides = [1, 1]} : vector<8x96xf32> to vector<8x32xf32>
    %404 = math.tanh %397 : vector<8x32xf32>
    %405 = arith.mulf %403, %404 : vector<8x32xf32>
    %406 = vector.extract_strided_slice %388 {offsets = [0, 64], sizes = [8, 32], strides = [1, 1]} : vector<8x96xf32> to vector<8x32xf32>
    %407 = math.tanh %402 : vector<8x32xf32>
    %408 = arith.mulf %406, %407 : vector<8x32xf32>
    %409 = vector.broadcast %c5_i32 : i32 to vector<8x1xi32>
    %410 = arith.cmpi sgt, %10, %409 : vector<8x1xi32>
    %c7_i32_64 = arith.constant 7 : i32
    %411 = arith.subi %c7_i32_64, %c5_i32 : i32
    %412 = vector.broadcast %411 : i32 to vector<8x1xi32>
    %413 = arith.cmpi sgt, %10, %412 : vector<8x1xi32>
    %414 = vector.shape_cast %410 : vector<8x1xi1> to vector<8x1xi1>
    %415 = vector.broadcast %414 : vector<8x1xi1> to vector<8x32xi1>
    %416 = arith.select %415, %405, %347 : vector<8x32xi1>, vector<8x32xf32>
    %417 = vector.shape_cast %413 : vector<8x1xi1> to vector<8x1xi1>
    %418 = vector.broadcast %417 : vector<8x1xi1> to vector<8x32xi1>
    %419 = arith.select %418, %408, %350 : vector<8x32xi1>, vector<8x32xf32>
    %420 = vector.shape_cast %410 : vector<8x1xi1> to vector<8x1xi1>
    %421 = vector.broadcast %420 : vector<8x1xi1> to vector<8x32xi1>
    %422 = arith.select %421, %397, %353 : vector<8x32xi1>, vector<8x32xf32>
    %423 = vector.shape_cast %413 : vector<8x1xi1> to vector<8x1xi1>
    %424 = vector.broadcast %423 : vector<8x1xi1> to vector<8x32xi1>
    %425 = arith.select %424, %402, %356 : vector<8x32xi1>, vector<8x32xf32>
    %c6_i32 = arith.constant 6 : i32
    %426 = tpu.concatenate %416, %419 in 1 : vector<8x32xf32>, vector<8x32xf32> -> vector<8x64xf32>
    %427 = arith.truncf %426 : vector<8x64xf32> to vector<8x64xbf16>
    %cst_65 = arith.constant dense<0.000000e+00> : vector<8x256xf32>
    %428 = tpu.matmul %427, %9, %cst_65 {dimension_numbers = #tpu.dot_dimension_numbers<[1], [0], [0], [1], [0, 0, 1, 1], [], []>} : vector<8x64xbf16>, vector<64x256xbf16>, vector<8x256xf32> -> vector<8x256xf32>
    %c8_i32_66 = arith.constant 8 : i32
    %429 = arith.muli %c6_i32, %c8_i32_66 : i32
    %430 = tpu.assume_multiple %429, 8 : i32
    %c7_i32_67 = arith.constant 7 : i32
    %431 = arith.subi %c7_i32_67, %c6_i32 : i32
    %c8_i32_68 = arith.constant 8 : i32
    %432 = arith.muli %431, %c8_i32_68 : i32
    %433 = tpu.assume_multiple %432, 8 : i32
    %434 = arith.index_cast %430 : i32 to index
    %c0_69 = arith.constant 0 : index
    %435 = vector.load %arg9[%434, %c0_69] : memref<64x256xbf16, #tpu.memory_space<vmem>>, vector<8x256xbf16>
    %436 = arith.index_cast %433 : i32 to index
    %c0_70 = arith.constant 0 : index
    %437 = vector.load %arg9[%436, %c0_70] : memref<64x256xbf16, #tpu.memory_space<vmem>>, vector<8x256xbf16>
    %438 = vector.extract_strided_slice %435 {offsets = [0, 0], sizes = [8, 128], strides = [1, 1]} : vector<8x256xbf16> to vector<8x128xbf16>
    %439 = arith.extf %438 : vector<8x128xbf16> to vector<8x128xf32>
    %440 = vector.extract_strided_slice %428 {offsets = [0, 0], sizes = [8, 128], strides = [1, 1]} : vector<8x256xf32> to vector<8x128xf32>
    %441 = arith.addf %439, %440 : vector<8x128xf32>
    %442 = vector.extract_strided_slice %437 {offsets = [0, 128], sizes = [8, 128], strides = [1, 1]} : vector<8x256xbf16> to vector<8x128xbf16>
    %443 = arith.extf %442 : vector<8x128xbf16> to vector<8x128xf32>
    %444 = vector.extract_strided_slice %428 {offsets = [0, 128], sizes = [8, 128], strides = [1, 1]} : vector<8x256xf32> to vector<8x128xf32>
    %445 = arith.addf %443, %444 : vector<8x128xf32>
    %446 = vector.extract_strided_slice %441 {offsets = [0, 0], sizes = [8, 96], strides = [1, 1]} : vector<8x128xf32> to vector<8x96xf32>
    %447 = arith.negf %446 : vector<8x96xf32>
    %448 = math.exp %447 : vector<8x96xf32>
    %cst_71 = arith.constant 1.000000e+00 : f32
    %449 = vector.broadcast %cst_71 : f32 to vector<8x96xf32>
    %450 = arith.addf %449, %448 : vector<8x96xf32>
    %451 = arith.divf %449, %450 : vector<8x96xf32>
    %452 = vector.extract_strided_slice %445 {offsets = [0, 0], sizes = [8, 96], strides = [1, 1]} : vector<8x128xf32> to vector<8x96xf32>
    %453 = arith.negf %452 : vector<8x96xf32>
    %454 = math.exp %453 : vector<8x96xf32>
    %cst_72 = arith.constant 1.000000e+00 : f32
    %455 = vector.broadcast %cst_72 : f32 to vector<8x96xf32>
    %456 = arith.addf %455, %454 : vector<8x96xf32>
    %457 = arith.divf %455, %456 : vector<8x96xf32>
    %458 = vector.extract_strided_slice %441 {offsets = [0, 96], sizes = [8, 32], strides = [1, 1]} : vector<8x128xf32> to vector<8x32xf32>
    %459 = math.tanh %458 : vector<8x32xf32>
    %460 = vector.extract_strided_slice %445 {offsets = [0, 96], sizes = [8, 32], strides = [1, 1]} : vector<8x128xf32> to vector<8x32xf32>
    %461 = math.tanh %460 : vector<8x32xf32>
    %462 = vector.extract_strided_slice %451 {offsets = [0, 32], sizes = [8, 32], strides = [1, 1]} : vector<8x96xf32> to vector<8x32xf32>
    %463 = arith.mulf %462, %422 : vector<8x32xf32>
    %464 = vector.extract_strided_slice %451 {offsets = [0, 0], sizes = [8, 32], strides = [1, 1]} : vector<8x96xf32> to vector<8x32xf32>
    %465 = arith.mulf %464, %459 : vector<8x32xf32>
    %466 = arith.addf %463, %465 : vector<8x32xf32>
    %467 = vector.extract_strided_slice %457 {offsets = [0, 32], sizes = [8, 32], strides = [1, 1]} : vector<8x96xf32> to vector<8x32xf32>
    %468 = arith.mulf %467, %425 : vector<8x32xf32>
    %469 = vector.extract_strided_slice %457 {offsets = [0, 0], sizes = [8, 32], strides = [1, 1]} : vector<8x96xf32> to vector<8x32xf32>
    %470 = arith.mulf %469, %461 : vector<8x32xf32>
    %471 = arith.addf %468, %470 : vector<8x32xf32>
    %472 = vector.extract_strided_slice %451 {offsets = [0, 64], sizes = [8, 32], strides = [1, 1]} : vector<8x96xf32> to vector<8x32xf32>
    %473 = math.tanh %466 : vector<8x32xf32>
    %474 = arith.mulf %472, %473 : vector<8x32xf32>
    %475 = vector.extract_strided_slice %457 {offsets = [0, 64], sizes = [8, 32], strides = [1, 1]} : vector<8x96xf32> to vector<8x32xf32>
    %476 = math.tanh %471 : vector<8x32xf32>
    %477 = arith.mulf %475, %476 : vector<8x32xf32>
    %478 = vector.broadcast %c6_i32 : i32 to vector<8x1xi32>
    %479 = arith.cmpi sgt, %10, %478 : vector<8x1xi32>
    %c7_i32_73 = arith.constant 7 : i32
    %480 = arith.subi %c7_i32_73, %c6_i32 : i32
    %481 = vector.broadcast %480 : i32 to vector<8x1xi32>
    %482 = arith.cmpi sgt, %10, %481 : vector<8x1xi32>
    %483 = vector.shape_cast %479 : vector<8x1xi1> to vector<8x1xi1>
    %484 = vector.broadcast %483 : vector<8x1xi1> to vector<8x32xi1>
    %485 = arith.select %484, %474, %416 : vector<8x32xi1>, vector<8x32xf32>
    %486 = vector.shape_cast %482 : vector<8x1xi1> to vector<8x1xi1>
    %487 = vector.broadcast %486 : vector<8x1xi1> to vector<8x32xi1>
    %488 = arith.select %487, %477, %419 : vector<8x32xi1>, vector<8x32xf32>
    %489 = vector.shape_cast %479 : vector<8x1xi1> to vector<8x1xi1>
    %490 = vector.broadcast %489 : vector<8x1xi1> to vector<8x32xi1>
    %491 = arith.select %490, %466, %422 : vector<8x32xi1>, vector<8x32xf32>
    %492 = vector.shape_cast %482 : vector<8x1xi1> to vector<8x1xi1>
    %493 = vector.broadcast %492 : vector<8x1xi1> to vector<8x32xi1>
    %494 = arith.select %493, %471, %425 : vector<8x32xi1>, vector<8x32xf32>
    %c7_i32_74 = arith.constant 7 : i32
    %495 = tpu.concatenate %485, %488 in 1 : vector<8x32xf32>, vector<8x32xf32> -> vector<8x64xf32>
    %496 = arith.truncf %495 : vector<8x64xf32> to vector<8x64xbf16>
    %cst_75 = arith.constant dense<0.000000e+00> : vector<8x256xf32>
    %497 = tpu.matmul %496, %9, %cst_75 {dimension_numbers = #tpu.dot_dimension_numbers<[1], [0], [0], [1], [0, 0, 1, 1], [], []>} : vector<8x64xbf16>, vector<64x256xbf16>, vector<8x256xf32> -> vector<8x256xf32>
    %c8_i32_76 = arith.constant 8 : i32
    %498 = arith.muli %c7_i32_74, %c8_i32_76 : i32
    %499 = tpu.assume_multiple %498, 8 : i32
    %c7_i32_77 = arith.constant 7 : i32
    %500 = arith.subi %c7_i32_77, %c7_i32_74 : i32
    %c8_i32_78 = arith.constant 8 : i32
    %501 = arith.muli %500, %c8_i32_78 : i32
    %502 = tpu.assume_multiple %501, 8 : i32
    %503 = arith.index_cast %499 : i32 to index
    %c0_79 = arith.constant 0 : index
    %504 = vector.load %arg9[%503, %c0_79] : memref<64x256xbf16, #tpu.memory_space<vmem>>, vector<8x256xbf16>
    %505 = arith.index_cast %502 : i32 to index
    %c0_80 = arith.constant 0 : index
    %506 = vector.load %arg9[%505, %c0_80] : memref<64x256xbf16, #tpu.memory_space<vmem>>, vector<8x256xbf16>
    %507 = vector.extract_strided_slice %504 {offsets = [0, 0], sizes = [8, 128], strides = [1, 1]} : vector<8x256xbf16> to vector<8x128xbf16>
    %508 = arith.extf %507 : vector<8x128xbf16> to vector<8x128xf32>
    %509 = vector.extract_strided_slice %497 {offsets = [0, 0], sizes = [8, 128], strides = [1, 1]} : vector<8x256xf32> to vector<8x128xf32>
    %510 = arith.addf %508, %509 : vector<8x128xf32>
    %511 = vector.extract_strided_slice %506 {offsets = [0, 128], sizes = [8, 128], strides = [1, 1]} : vector<8x256xbf16> to vector<8x128xbf16>
    %512 = arith.extf %511 : vector<8x128xbf16> to vector<8x128xf32>
    %513 = vector.extract_strided_slice %497 {offsets = [0, 128], sizes = [8, 128], strides = [1, 1]} : vector<8x256xf32> to vector<8x128xf32>
    %514 = arith.addf %512, %513 : vector<8x128xf32>
    %515 = vector.extract_strided_slice %510 {offsets = [0, 0], sizes = [8, 96], strides = [1, 1]} : vector<8x128xf32> to vector<8x96xf32>
    %516 = arith.negf %515 : vector<8x96xf32>
    %517 = math.exp %516 : vector<8x96xf32>
    %cst_81 = arith.constant 1.000000e+00 : f32
    %518 = vector.broadcast %cst_81 : f32 to vector<8x96xf32>
    %519 = arith.addf %518, %517 : vector<8x96xf32>
    %520 = arith.divf %518, %519 : vector<8x96xf32>
    %521 = vector.extract_strided_slice %514 {offsets = [0, 0], sizes = [8, 96], strides = [1, 1]} : vector<8x128xf32> to vector<8x96xf32>
    %522 = arith.negf %521 : vector<8x96xf32>
    %523 = math.exp %522 : vector<8x96xf32>
    %cst_82 = arith.constant 1.000000e+00 : f32
    %524 = vector.broadcast %cst_82 : f32 to vector<8x96xf32>
    %525 = arith.addf %524, %523 : vector<8x96xf32>
    %526 = arith.divf %524, %525 : vector<8x96xf32>
    %527 = vector.extract_strided_slice %510 {offsets = [0, 96], sizes = [8, 32], strides = [1, 1]} : vector<8x128xf32> to vector<8x32xf32>
    %528 = math.tanh %527 : vector<8x32xf32>
    %529 = vector.extract_strided_slice %514 {offsets = [0, 96], sizes = [8, 32], strides = [1, 1]} : vector<8x128xf32> to vector<8x32xf32>
    %530 = math.tanh %529 : vector<8x32xf32>
    %531 = vector.extract_strided_slice %520 {offsets = [0, 32], sizes = [8, 32], strides = [1, 1]} : vector<8x96xf32> to vector<8x32xf32>
    %532 = arith.mulf %531, %491 : vector<8x32xf32>
    %533 = vector.extract_strided_slice %520 {offsets = [0, 0], sizes = [8, 32], strides = [1, 1]} : vector<8x96xf32> to vector<8x32xf32>
    %534 = arith.mulf %533, %528 : vector<8x32xf32>
    %535 = arith.addf %532, %534 : vector<8x32xf32>
    %536 = vector.extract_strided_slice %526 {offsets = [0, 32], sizes = [8, 32], strides = [1, 1]} : vector<8x96xf32> to vector<8x32xf32>
    %537 = arith.mulf %536, %494 : vector<8x32xf32>
    %538 = vector.extract_strided_slice %526 {offsets = [0, 0], sizes = [8, 32], strides = [1, 1]} : vector<8x96xf32> to vector<8x32xf32>
    %539 = arith.mulf %538, %530 : vector<8x32xf32>
    %540 = arith.addf %537, %539 : vector<8x32xf32>
    %541 = vector.extract_strided_slice %520 {offsets = [0, 64], sizes = [8, 32], strides = [1, 1]} : vector<8x96xf32> to vector<8x32xf32>
    %542 = math.tanh %535 : vector<8x32xf32>
    %543 = arith.mulf %541, %542 : vector<8x32xf32>
    %544 = vector.extract_strided_slice %526 {offsets = [0, 64], sizes = [8, 32], strides = [1, 1]} : vector<8x96xf32> to vector<8x32xf32>
    %545 = math.tanh %540 : vector<8x32xf32>
    %546 = arith.mulf %544, %545 : vector<8x32xf32>
    %547 = vector.broadcast %c7_i32_74 : i32 to vector<8x1xi32>
    %548 = arith.cmpi sgt, %10, %547 : vector<8x1xi32>
    %c7_i32_83 = arith.constant 7 : i32
    %549 = arith.subi %c7_i32_83, %c7_i32_74 : i32
    %550 = vector.broadcast %549 : i32 to vector<8x1xi32>
    %551 = arith.cmpi sgt, %10, %550 : vector<8x1xi32>
    %552 = vector.shape_cast %548 : vector<8x1xi1> to vector<8x1xi1>
    %553 = vector.broadcast %552 : vector<8x1xi1> to vector<8x32xi1>
    %554 = arith.select %553, %543, %485 : vector<8x32xi1>, vector<8x32xf32>
    %555 = vector.shape_cast %551 : vector<8x1xi1> to vector<8x1xi1>
    %556 = vector.broadcast %555 : vector<8x1xi1> to vector<8x32xi1>
    %557 = arith.select %556, %546, %488 : vector<8x32xi1>, vector<8x32xf32>
    %558 = vector.shape_cast %548 : vector<8x1xi1> to vector<8x1xi1>
    %559 = vector.broadcast %558 : vector<8x1xi1> to vector<8x32xi1>
    %560 = arith.select %559, %535, %491 : vector<8x32xi1>, vector<8x32xf32>
    %561 = vector.shape_cast %551 : vector<8x1xi1> to vector<8x1xi1>
    %562 = vector.broadcast %561 : vector<8x1xi1> to vector<8x32xi1>
    %563 = arith.select %562, %540, %494 : vector<8x32xi1>, vector<8x32xf32>
    %c8_i32_84 = arith.constant 8 : i32
    %564 = tpu.concatenate %554, %557 in 1 : vector<8x32xf32>, vector<8x32xf32> -> vector<8x64xf32>
    %565 = arith.truncf %564 : vector<8x64xf32> to vector<8x64xbf16>
    %c0_85 = arith.constant 0 : index
    %c0_86 = arith.constant 0 : index
    %566 = vector.load %arg6[%c0_85, %c0_86] : memref<64x128xbf16, #tpu.memory_space<vmem>>, vector<64x128xbf16>
    %cst_87 = arith.constant dense<0.000000e+00> : vector<8x128xf32>
    %567 = tpu.matmul %565, %566, %cst_87 {dimension_numbers = #tpu.dot_dimension_numbers<[1], [0], [0], [1], [0, 0, 1, 1], [], []>} : vector<8x64xbf16>, vector<64x128xbf16>, vector<8x128xf32> -> vector<8x128xf32>
    %c0_88 = arith.constant 0 : index
    %c0_89 = arith.constant 0 : index
    %568 = vector.load %arg7[%c0_88, %c0_89] : memref<1x128xf32, #tpu.memory_space<vmem>>, vector<1x128xf32>
    %569 = vector.broadcast %568 : vector<1x128xf32> to vector<8x128xf32>
    %570 = arith.addf %567, %569 : vector<8x128xf32>
    %c0_90 = arith.constant 0 : index
    %c0_91 = arith.constant 0 : index
    %571 = vector.load %arg8[%c0_90, %c0_91] : memref<8x128xf32, #tpu.memory_space<vmem>>, vector<8x128xf32>
    tpu.vector_store %arg8[%c0_90, %c0_91], %570 {strides = array<i32>} : memref<8x128xf32, #tpu.memory_space<vmem>>, vector<8x128xf32>,
    return
  }
  func.func @transform_0(%arg0: i32) -> (i32, i32, i32) {
    %c0_i32 = arith.constant 0 : i32
    %c0_i32_0 = arith.constant 0 : i32
    %c0_i32_1 = arith.constant 0 : i32
    return %c0_i32, %arg0, %c0_i32_0 : i32, i32, i32
  }
  func.func @transform_1(%arg0: i32) -> (i32, i32) {
    %c0_i32 = arith.constant 0 : i32
    %c0_i32_0 = arith.constant 0 : i32
    return %arg0, %c0_i32 : i32, i32
  }
  func.func @transform_2(%arg0: i32) -> (i32, i32) {
    %c0_i32 = arith.constant 0 : i32
    %c0_i32_0 = arith.constant 0 : i32
    %c0_i32_1 = arith.constant 0 : i32
    return %c0_i32, %c0_i32_0 : i32, i32
  }
  func.func @transform_3(%arg0: i32) -> (i32, i32) {
    %c0_i32 = arith.constant 0 : i32
    %c0_i32_0 = arith.constant 0 : i32
    %c0_i32_1 = arith.constant 0 : i32
    return %c0_i32, %c0_i32_0 : i32, i32
  }
  func.func @transform_4(%arg0: i32) -> (i32, i32) {
    %c0_i32 = arith.constant 0 : i32
    %c0_i32_0 = arith.constant 0 : i32
    %c0_i32_1 = arith.constant 0 : i32
    return %c0_i32, %c0_i32_0 : i32, i32
  }
  func.func @transform_5(%arg0: i32) -> (i32, i32) {
    %c0_i32 = arith.constant 0 : i32
    %c0_i32_0 = arith.constant 0 : i32
    %c0_i32_1 = arith.constant 0 : i32
    return %c0_i32, %c0_i32_0 : i32, i32
  }
  func.func @transform_6(%arg0: i32) -> (i32, i32) {
    %c0_i32 = arith.constant 0 : i32
    %c0_i32_0 = arith.constant 0 : i32
    %c0_i32_1 = arith.constant 0 : i32
    return %c0_i32, %c0_i32_0 : i32, i32
  }
  func.func @transform_7(%arg0: i32) -> (i32, i32) {
    %c0_i32 = arith.constant 0 : i32
    %c0_i32_0 = arith.constant 0 : i32
    return %arg0, %c0_i32 : i32, i32
  }
}

</mosaic_0001>

<bundles_post_ra>
// kernel: tpu_custom_call.1
= control target key start
LH: loop header
LB: loop body
LE: loop exit
PB: predicated region body
PF: predicated region fallthrough
CT: control target
= control target key end

     0   :  { %12 = vsyncpa [#allocation4], 0  ;;  %s2311_s0 = inlined_call_operand.hbm [shape: bf16[8,8,32], index: 0, kind: input, shape index: {}]   ;;  %s2312_s1 = inlined_call_operand.vmem [shape: s32[8,1], index: 1, kind: input, shape index: {}]   ;;  %s2313_s2 = inlined_call_operand.hbm [shape: bf16[32,256], index: 2, kind: input, shape index: {}]   ;;  %s2314_s3 = inlined_call_operand.vmem [shape: f32[1,256], index: 3, kind: input, shape index: {}]   ;;  %s2315_s4 = inlined_call_operand.hbm [shape: bf16[64,256], index: 4, kind: input, shape index: {}]   ;;  %s2316_s5 = inlined_call_operand.hbm [shape: bf16[64,128], index: 5, kind: input, shape index: {}]   ;;  %s2317_s6 = inlined_call_operand.vmem [shape: f32[1,128], index: 6, kind: input, shape index: {}]   ;;  %s2318_s7 = inlined_call_operand.hbm [shape: f32[8,128], index: 7, kind: output, shape index: {}]  }
   0x1   :  { %13 = vsyncpa [#allocation7], 0 }
   0x2   :  { %14 = vsyncpa [#allocation10], 0 }
   0x3   :  { %15 = vsyncpa [#allocation5], 0  ;;  %s1790_s24 = smov [#allocation6]  }
   0x4   :  { %s35_s25 = sshll.u32 %s1790_s24, 4  ;;  %s36_s25 = int_to_ptr.vmem [resolvable:$true] %s35_s25 }
   0x5   :  { %s1690_s26 = scalar_lea.vmem %s36_s25, 512  ;;  %p1695_p1 = scmp.lt.s32.totalorder %s36_s25, %s36_s25 }
   0x6   :  { %p1691_p0 = scmp.ne.s32.totalorder %s36_s25, %s1690_s26  ;;  %p1696_p2 = scmp.lt.s32.totalorder %s1690_s26, %s1690_s26 }
   0x8   :  { %p1697_p3 = por %p1696_p2, %p1695_p1 }
   0xa   :  { %p1698_p4 = pnand %p1697_p3, %p1691_p0 }
   0xc   :  { %1701 = shalt.err (!%p1698_p4)
}
   0xd   :  { %s1791_s27 = smov 128   ;;  %s1792_s28 = smov 8  }
   0xe   :  { %41 = dma.hbm_to_vmem [thread:$0]  %s2313_s2, 512, %s36_s25, [#allocation7], %s1791_s27, %s1791_s27, %s1792_s28  }
   0xf   :  { %s1793_s8 = smov [#allocation3]  }
  0x10   :  { %s21_s9 = sshll.u32 %s1793_s8, 4  ;;  %s22_s9 = int_to_ptr.vmem [resolvable:$true] %s21_s9 }
  0x11   :  { %s1710_s10 = scalar_lea.vmem %s22_s9, 512  ;;  %p1715_p6 = scmp.lt.s32.totalorder %s22_s9, %s22_s9 }
  0x12   :  { %p1711_p5 = scmp.ne.s32.totalorder %s22_s9, %s1710_s10  ;;  %p1716_p7 = scmp.lt.s32.totalorder %s1710_s10, %s1710_s10 }
  0x14   :  { %p1717_p8 = por %p1716_p7, %p1715_p6 }
  0x16   :  { %p1718_p9 = pnand %p1717_p8, %p1711_p5 }
  0x18   :  { %1721 = shalt.err (!%p1718_p9)
}
  0x19   :  { %s1794_s11 = smov 64   ;;  %s1795_s12 = smov 4  }
  0x1a   :  { %27 = dma.hbm_to_vmem [thread:$0]  %s2311_s0, 512, %s22_s9, [#allocation4], %s1794_s11, %s1794_s11, %s1795_s12  }
  0x1b   :  { %s1796_s15 = smov [#allocation8]   ;;  %s1797_s16 = smov [#allocation9]  }
  0x1c   :  { %s49_s2 = sshll.u32 %s1796_s15, 4  ;;  %s61_s17 = sshll.u32 %s1797_s16, 4  ;;  %s50_s2 = int_to_ptr.vmem [resolvable:$true] %s49_s2  ;;  %s62_s17 = int_to_ptr.vmem [resolvable:$true] %s61_s17 }
  0x1d   :  { %s1730_s18 = scalar_lea.vmem %s50_s2, 1024  ;;  %p1735_p11 = scmp.lt.s32.totalorder %s50_s2, %s50_s2 }
  0x1e   :  { %p1731_p10 = scmp.ne.s32.totalorder %s50_s2, %s1730_s18  ;;  %p1736_p12 = scmp.lt.s32.totalorder %s1730_s18, %s1730_s18 }
  0x20   :  { %p1737_p13 = por %p1736_p12, %p1735_p11 }
  0x22   :  { %p1738_p0 = pnand %p1737_p13, %p1731_p10 }
  0x24   :  { %1741 = shalt.err (!%p1738_p0)
}
  0x25   :  { %55 = dma.hbm_to_vmem [thread:$0]  %s2315_s4, 1024, %s50_s2, [#allocation7], %s1791_s27, %s1791_s27, %s1792_s28  }
  0x26   :  { %s1750_s0 = scalar_lea.vmem %s62_s17, 512  ;;  %p1755_p2 = scmp.lt.s32.totalorder %s62_s17, %s62_s17 }
  0x27   :  { %p1751_p1 = scmp.ne.s32.totalorder %s62_s17, %s1750_s0  ;;  %p1756_p3 = scmp.lt.s32.totalorder %s1750_s0, %s1750_s0 }
  0x29   :  { %p1757_p4 = por %p1756_p3, %p1755_p2 }
  0x2b   :  { %p1758_p5 = pnand %p1757_p4, %p1751_p1 }
  0x2d   :  { %1761 = shalt.err (!%p1758_p5)
}
  0x2e   :  { %67 = dma.hbm_to_vmem [thread:$0]  %s2316_s5, 512, %s62_s17, [#allocation10], %s1794_s11, %s1794_s11, %s1795_s12  }
  0x2f   :  { %1782 = dma.done.wait [#allocation4], 512  }
  0x30   :  { %1783 = vsyncadd [#allocation4], 4294966784 }
  0x31   :  { %1784 = dma.done.wait [#allocation7], 1536  }
  0x32   :  { %1785 = vsyncadd [#allocation7], 4294965760 }
  0x33   :  { %1786 = dma.done.wait [#allocation10], 512  }
  0x34   :  { %1787 = vsyncadd [#allocation10], 4294966784  ;;  %v1798_v0 = vmov 0   ;;  %v1528_v1 = vld [vmem:[#allocation6 + $0x14] ss:$8 sps:$4 sm:$0xff]   ;;  %v1540_v9 = vld [vmem:[#allocation3] sm:$0xff]   ;;  %v97_v18 = vlaneseq }
  0x35   :  { %192 = vmatprep.mubr.bf16.mxu0 %v1798_v0  ;;  %375 = vmatprep.mubr.bf16.mxu1 %v1798_v0  ;;  %v1871_v2 = vld [vmem:[#allocation8 + $0x34] ss:$8 sps:$4 sm:$0xff]   ;;  %v1532_v3 = vld [vmem:[#allocation6 + $0x10] ss:$8 sps:$4 sm:$0xff]   ;;  %v1534_v5 = vld [vmem:[#allocation6 + $0x4] ss:$8 sps:$4 sm:$0xff]  }
  0x36   :  { %1526 = vset.pattern.permute.xlu0 %v1798_v0  ;;  %1527 = vset.pattern.permute.xlu1 %v1798_v0  ;;  %v1873_v4 = vld [vmem:[#allocation8 + $0x30] ss:$8 sps:$4 sm:$0xff]   ;;  %v1877_v6 = vld [vmem:[#allocation8 + $0x24] ss:$8 sps:$4 sm:$0xff]   ;;  %v1538_v7 = vld [vmem:[#allocation6] ss:$8 sps:$4 sm:$0xff]  }
  0x37   :  { %172 = vmatprep.subr.bf16.mxu0 %v1528_v1  ;;  %351 = vmatprep.subr.bf16.mxu1 %v1871_v2  ;;  %v1879_v8 = vld [vmem:[#allocation8 + $0x20] ss:$8 sps:$4 sm:$0xff]   ;;  %v1882_v10 = vld [vmem:[#allocation8 + $0x14] ss:$8 sps:$4 sm:$0xff]   ;;  %vm147_vm0 = vcmask 261120   ;;  %v1799_v15 = vmov 0.0|0.0  }
  0x38   :  { %173 = vmatpush1.bf16.msra.mxu0 %v1532_v3  ;;  %352 = vmatpush1.bf16.msra.mxu1 %v1873_v4  ;;  %v1885_v11 = vld [vmem:[#allocation8 + $0x10] ss:$8 sps:$4 sm:$0xff]   ;;  %v1888_v12 = vld [vmem:[#allocation8 + $0x4] ss:$8 sps:$4 sm:$0xff]   ;;  %v1893_v13 = vld [vmem:[#allocation8] ss:$8 sps:$4 sm:$0xff]  }
  0x39   :  { %174 = vmatprep.subr.bf16.mxu0 %v1534_v5  ;;  %353 = vmatprep.subr.bf16.mxu1 %v1877_v6  ;;  %v1547_v14 = vld [vmem:[#allocation3 + $0x8] sm:$0xff]   ;;  %v1548_v16 = vld [vmem:[#allocation3 + $0x10] sm:$0xff]   ;;  %v1549_v17 = vld [vmem:[#allocation3 + $0x18] sm:$0xff]   ;;  %v98_v19 = vshrl.u32 %v97_v18, 7  ;;  %vm339_vm5 = vcmask 523264   ;;  %s1804_s27 = smov [#allocation11]  }
  0x3a   :  { %v95_v22 = vld [vmem:[%s2314_s3] sm:$0x3]  ;;  %s1800_s3 = smov 32   ;;  %s1411_s28 = sshll.u32 %s1804_s27, 4  ;;  %s1412_s28 = int_to_ptr.vmem [resolvable:$true] %s1411_s28 }
  0x3b   :  { %v99_v20 = vsub.s32 0, %v98_v19  ;;  %v103_v21 = vsub.s32 1, %v98_v19  ;;  %s1762_s29 = scalar_lea.vmem %s1412_s28, 128  ;;  %p1767_p7 = scmp.lt.s32.totalorder %s1412_s28, %s1412_s28 }
  0x3c   :  { %175 = vmatpush1.bf16.msra.mxu0 %v1538_v7  ;;  %354 = vmatpush1.bf16.msra.mxu1 %v1879_v8  ;;  %p1763_p6 = scmp.ne.s32.totalorder %s1412_s28, %s1762_s29  ;;  %p1768_p8 = scmp.lt.s32.totalorder %s1762_s29, %s1762_s29 }
  0x3d   :  { %355 = vmatprep.subr.bf16.mxu1 %v1882_v10  ;;  %617 = vmatprep.subr.bf16.mxu0 %v1871_v2  ;;  %v100_v23 = vrot.slane %v95_v22, %v99_v20  ;;  %v104_v24 = vrot.slane %v95_v22, %v103_v21  ;;  %v1947_v20 = vld [vmem:[%s2312_s1] sm:$0xff]  ;;  %s1801_s1 = smov 96  }
  0x3e   :  { %vm447_vm1 = vcmp.gt.s32.totalorder %v1947_v20, 0  ;;  %vm448_vm2 = vcmp.gt.s32.totalorder %v1947_v20, 7  ;;  %vm580_vm6 = vcmp.gt.s32.totalorder %v1947_v20, 1  ;;  %vm581_vm7 = vcmp.gt.s32.totalorder %v1947_v20, 6  ;;  %p1769_p9 = por %p1768_p8, %p1767_p7 }
  0x3f   :  { %1437 = vmatmul.mubr.msk.bf16.vlgmr.msra.gmra.mxu0 %vm147_vm0, %v1540_v9  ;;  %v449_v22 = vsel %vm447_vm1, 1, %v1798_v0  ;;  %vm713_vm10 = vcmp.gt.s32.totalorder %v1947_v20, 2  ;;  %vm714_vm11 = vcmp.gt.s32.totalorder %v1947_v20, 5  ;;  %vm846_vm14 = vcmp.gt.s32.totalorder %v1947_v20, 3 }
  0x40   :  { %356 = vmatpush1.bf16.msra.mxu1 %v1885_v11  ;;  %202 = vmatprep.mubr.bf16.mxu0 %v1798_v0  ;;  %vm847_vm15 = vcmp.gt.s32.totalorder %v1947_v20, 4  ;;  %p1770_p10 = pnand %p1769_p9, %p1763_p6 }
  0x41   :  { %357 = vmatprep.subr.bf16.mxu1 %v1888_v12  ;;  %618 = vmatpush1.bf16.msra.mxu0 %v1873_v4 }
  0x42   :  { %619 = vmatprep.subr.bf16.mxu0 %v1877_v6 }
  0x44   :  { %358 = vmatpush1.bf16.msra.mxu1 %v1893_v13 }
  0x45   :  { %484 = vmatprep.subr.bf16.mxu1 %v1871_v2  ;;  %620 = vmatpush1.bf16.msra.mxu0 %v1879_v8 }
  0x46   :  { %621 = vmatprep.subr.bf16.mxu0 %v1882_v10 }
  0x47   :  { %1438 = vmatmul.mubr.msk.bf16.gmra.mxu0 %vm147_vm0, %v1547_v14  ;;  %376 = vmatmul.mubr.bf16.vlgmr.msra.gmra.mxu1 %v1799_v15 }
  0x48   :  { %212 = vmatprep.mubr.bf16.mxu0 %v1798_v0  ;;  %485 = vmatpush1.bf16.msra.mxu1 %v1873_v4 }
  0x49   :  { %486 = vmatprep.subr.bf16.mxu1 %v1877_v6  ;;  %508 = vmatprep.mubr.bf16.mxu1 %v1798_v0 }
  0x4a   :  { %622 = vmatpush1.bf16.msra.mxu0 %v1885_v11 }
  0x4b   :  { %623 = vmatprep.subr.bf16.mxu0 %v1888_v12 }
  0x4c   :  { %487 = vmatpush1.bf16.msra.mxu1 %v1879_v8 }
  0x4d   :  { %488 = vmatprep.subr.bf16.mxu1 %v1882_v10 }
  0x4e   :  { %624 = vmatpush1.bf16.msra.mxu0 %v1893_v13 }
  0x4f   :  { %1439 = vmatmul.mubr.msk.bf16.gmra.mxu0 %vm147_vm0, %v1548_v16  ;;  %883 = vmatprep.subr.bf16.mxu0 %v1871_v2 }
  0x50   :  { %222 = vmatprep.mubr.bf16.mxu0 %v1798_v0  ;;  %489 = vmatpush1.bf16.msra.mxu1 %v1885_v11 }
  0x51   :  { %490 = vmatprep.subr.bf16.mxu1 %v1888_v12 }
  0x54   :  { %491 = vmatpush1.bf16.msra.mxu1 %v1893_v13 }
  0x55   :  { %750 = vmatprep.subr.bf16.mxu1 %v1871_v2 }
  0x57   :  { %1440 = vmatmul.mubr.msk.bf16.gmra.mxu0 %vm147_vm0, %v1549_v17 }
  0x58   :  { %641 = vmatprep.mubr.bf16.mxu0 %v1798_v0 }
  0xff   :  { %v194_v25 = vpop.f32.mrf.mxu0 }
 0x100   :  { %v195_v27 = vadd.f32 %v194_v25, %v100_v23 }
 0x101   :  { %v196_v26 = vpop.f32.mrf.mxu0 }
 0x102   :  { %v197_v28 = vadd.f32 %v196_v26, %v104_v24 }
 0x103   :  { %v198_v29 = vpop.f32.mrf.mxu0 }
 0x104   :  { %v1925_v30 = vpack.c.bf16 %v197_v28, %v195_v27  ;;  %v199_v31 = vadd.f32 %v198_v29, %v100_v23 }
 0x105   :  { %v200_v32 = vpop.f32.mrf.mxu0 }
 0x106   :  { %v201_v33 = vadd.f32 %v200_v32, %v104_v24  ;;  %v392_v34 = vunpack.c.l.bf16 %v1925_v30 }
 0x107   :  { %v204_v35 = vpop.f32.mrf.mxu0  ;;  %v377_v36 = vpop.f32.mrf.mxu1 }
 0x108   :  { %v1928_v37 = vpack.c.bf16 %v201_v33, %v199_v31  ;;  %v205_v38 = vadd.f32 %v204_v35, %v100_v23  ;;  %v393_v39 = vadd.f32 %v392_v34, %v377_v36  ;;  %v455_v36 = vsel %vm448_vm2, 1, %v1798_v0 }
 0x109   :  { %v206_v40 = vpop.f32.mrf.mxu0  ;;  %v379_v41 = vpop.f32.mrf.mxu1 }
 0x10a   :  { %1554 = vtanh.f32 %v393_v39  ;;  %v207_v42 = vadd.f32 %v206_v40, %v104_v24 }
 0x10b   :  { %v208_v43 = vpop.f32.mrf.mxu0  ;;  %v381_v44 = vpop.f32.mrf.mxu1 }
 0x10c   :  { %v1930_v45 = vpack.c.bf16 %v207_v42, %v205_v38  ;;  %v209_v46 = vadd.f32 %v208_v43, %v100_v23 }
 0x10d   :  { %v210_v47 = vpop.f32.mrf.mxu0  ;;  %v382_v48 = vpop.f32.mrf.mxu1 }
 0x10e   :  { %v211_v49 = vadd.f32 %v210_v47, %v104_v24 }
 0x10f   :  { %v214_v50 = vpop.f32.mrf.mxu0 }
 0x110   :  { %v1932_v51 = vpack.c.bf16 %v211_v49, %v209_v46  ;;  %v215_v52 = vadd.f32 %v214_v50, %v100_v23 }
 0x111   :  { %v216_v53 = vpop.f32.mrf.mxu0 }
 0x112   :  { %v217_v54 = vadd.f32 %v216_v53, %v104_v24 }
 0x113   :  { %v218_v55 = vpop.f32.mrf.mxu0 }
 0x114   :  { %v1934_v56 = vpack.c.bf16 %v217_v54, %v215_v52  ;;  %v219_v57 = vadd.f32 %v218_v55, %v100_v23 }
 0x115   :  { %v220_v58 = vpop.f32.mrf.mxu0 }
 0x116   :  { %v221_v59 = vadd.f32 %v220_v58, %v104_v24 }
 0x117   :  { %v1555_v60 = vpop.eup %1554  ;;  %v224_v61 = vpop.f32.mrf.mxu0 }
 0x118   :  { %v1936_v62 = vpack.c.bf16 %v221_v59, %v219_v57  ;;  %v225_v63 = vadd.f32 %v224_v61, %v100_v23  ;;  %415 = vrot.lane.b32.xlu0 %v1555_v60, %s1800_s3 }
 0x119   :  { %v226_v1 = vpop.f32.mrf.mxu0 }
 0x11a   :  { %v227_v3 = vadd.f32 %v226_v1, %v104_v24 }
 0x11b   :  { %v228_v5 = vpop.f32.mrf.mxu0 }
 0x11c   :  { %v1939_v7 = vpack.c.bf16 %v227_v3, %v225_v63  ;;  %v229_v14 = vadd.f32 %v228_v5, %v100_v23  ;;  %v1457_v23 = vmul.f32 -1.442695, %v393_v39  ;;  %v525_v63 = vunpack.c.l.bf16 %v1928_v37 }
 0x11d   :  { %v230_v9 = vpop.f32.mrf.mxu0 }
 0x11e   :  { %v231_v15 = vadd.f32 %v230_v9, %v104_v24  ;;  %v528_v61 = vrot.slane %v1939_v7, 4 }
 0x120   :  { %v1941_v16 = vpack.c.bf16 %v231_v15, %v229_v14  ;;  %v530_v5 = vunpack.c.l.bf16 %v528_v61 }
 0x122   :  { %v395_v17 = vrot.slane %v1941_v16, 4 }
 0x124   :  { %v397_v18 = vunpack.c.l.bf16 %v395_v17 }
 0x126   :  { %v398_v19 = vadd.f32 %v397_v18, %v379_v41 }
 0x128   :  { %1556 = vtanh.f32 %v398_v19  ;;  %v1458_v26 = vmul.f32 -1.442695, %v398_v19 }
 0x129   :  { %1558 = vpow2.f32 %v1457_v23 }
 0x135   :  { %v1557_v21 = vpop.eup %1556 }
 0x136   :  { %426 = vrot.lane.b32.xlu0 %v1557_v21, %s1800_s3  ;;  %v1559_v24 = vpop.eup %1558 }
 0x137   :  { %v402_v25 = vadd.f32 1.0, %v1559_v24 }
 0x139   :  { %1560 = vrcp.f32 %v402_v25 }
 0x13a   :  { %451 = vperm.xlu0 %1526, %v449_v22   ;;  %1562 = vpow2.f32 %v1458_v26 }
 0x146   :  { %v1561_v27 = vpop.eup %1560 }
 0x147   :  { %v1563_v31 = vpop.eup %1562  ;;  %v413_v38 = vmul.f32 0.0, %v1561_v27 }
 0x148   :  { %v408_v32 = vadd.f32 1.0, %v1563_v31 }
 0x14a   :  { %1564 = vrcp.f32 %v408_v32 }
 0x157   :  { %v1565_v33 = vpop.eup %1564 }
 0x158   :  { %v424_v42 = vmul.f32 0.0, %v1565_v33 }
 0x18a   :  { %v416_v28 = vpop.permute.xlu0 %415 }
 0x18b   :  { %v418_v29 = vmul.f32 %v1561_v27, %v416_v28 }
 0x18d   :  { %420 = vrot.lane.b32.xlu1 %v418_v29, %s1800_s3 }
 0x1a8   :  { %v427_v34 = vpop.permute.xlu0 %426 }
 0x1a9   :  { %v429_v35 = vmul.f32 %v1565_v33, %v427_v34  ;;  %v582_v34 = vsel %vm580_vm6, 1, %v1798_v0  ;;  %vm1803_vm6 = vmmov 0  }
 0x1ab   :  { %431 = vrot.lane.b32.xlu1 %v429_v35, %s1800_s3  ;;  %v588_v35 = vsel %vm581_vm7, 1, %v1798_v0 }
 0x1af   :  { %457 = vperm.xlu1 %1527, %v455_v36  }
 0x1b5   :  { %v1966_v48 = vpop.permute.xlu0 %451 }
 0x1b6   :  { %vm453_vm3 = vcmp.eq.s32.totalorder %v1966_v48, 1 }
 0x1ff   :  { %v421_v39 = vpop.permute.xlu1 %420 }
 0x200   :  { %v1956_v40 = vadd.f32 %v421_v39, %v413_v38 }
 0x202   :  { %1566 = vtanh.f32 %v1956_v40  ;;  %v2006_v36 = vsel %vm453_vm3, %v1956_v40, 0.0 }
 0x20f   :  { %v1567_v41 = vpop.eup %1566 }
 0x210   :  { %437 = vrot.lane.b32.xlu1 %v1567_v41, %s1800_s3 }
 0x21d   :  { %v432_v43 = vpop.permute.xlu1 %431 }
 0x21e   :  { %v1960_v44 = vadd.f32 %v432_v43, %v424_v42 }
 0x220   :  { %1568 = vtanh.f32 %v1960_v44 }
 0x22a   :  { %v1964_v47 = vpop.permute.xlu1 %457 }
 0x22b   :  { %vm459_vm4 = vcmp.eq.s32.totalorder %v1964_v47, 1  ;;  %v1480_v47 = vld [vmem:[%s2317_s6] ss:$0 sm:$0xff] }
 0x22c   :  { %v2012_v41 = vsel %vm459_vm4, %v1960_v44, 0.0 }
 0x22d   :  { %v1569_v46 = vpop.eup %1568 }
 0x22e   :  { %443 = vrot.lane.b32.xlu0 %v1569_v46, %s1800_s3 }
 0x282   :  { %v438_v49 = vpop.permute.xlu1 %437 }
 0x283   :  { %v440_v50 = vmul.f32 %v1561_v27, %v438_v49 }
 0x285   :  { %v1971_v52 = vsel %vm453_vm3, %v440_v50, 0.0 }
 0x286   :  { %464 = vrot.lane.b32.xlu1 %v1971_v52, %s1794_s11 }
 0x2a0   :  { %v444_v53 = vpop.permute.xlu0 %443 }
 0x2a1   :  { %v446_v54 = vmul.f32 %v1565_v33, %v444_v53 }
 0x2a3   :  { %v1978_v55 = vsel %vm459_vm4, %v446_v54, 0.0 }
 0x2a4   :  { %468 = vrot.lane.b32.xlu0 %v1978_v55, %s1801_s1 }
 0x2f8   :  { %v465_v57 = vpop.permute.xlu1 %464 }
 0x316   :  { %v469_v58 = vpop.permute.xlu0 %468 }
 0x317   :  { %v471_v59 = vsel %vm147_vm0, %v465_v57, %v469_v58 }
 0x318   :  { %v472_v60 = vpack.c.bf16 %v471_v59, %v471_v59 }
 0x31a   :  { %1459 = vmatmul.mubr.msk.bf16.vlgmr.msra.gmra.mxu1 %vm339_vm5, %v472_v60 }
 0x31b   :  { %751 = vmatpush1.bf16.msra.mxu1 %v1873_v4  ;;  %774 = vmatprep.mubr.bf16.mxu1 %v1798_v0 }
 0x31c   :  { %752 = vmatprep.subr.bf16.mxu1 %v1877_v6 }
 0x31f   :  { %753 = vmatpush1.bf16.msra.mxu1 %v1879_v8 }
 0x320   :  { %754 = vmatprep.subr.bf16.mxu1 %v1882_v10 }
 0x323   :  { %755 = vmatpush1.bf16.msra.mxu1 %v1885_v11 }
 0x324   :  { %756 = vmatprep.subr.bf16.mxu1 %v1888_v12 }
 0x327   :  { %757 = vmatpush1.bf16.msra.mxu1 %v1893_v13 }
 0x328   :  { %996 = vmatprep.subr.bf16.mxu1 %v1871_v2 }
 0x3da   :  { %v510_v1 = vpop.f32.mrf.mxu1 }
 0x3db   :  { %v526_v3 = vadd.f32 %v525_v63, %v510_v1 }
 0x3dc   :  { %v512_v9 = vpop.f32.mrf.mxu1 }
 0x3dd   :  { %1570 = vtanh.f32 %v526_v3  ;;  %v531_v14 = vadd.f32 %v530_v5, %v512_v9  ;;  %v1460_v21 = vmul.f32 -1.442695, %v526_v3  ;;  %v658_v5 = vunpack.c.l.bf16 %v1930_v45 }
 0x3de   :  { %v514_v15 = vpop.f32.mrf.mxu1 }
 0x3df   :  { %1572 = vtanh.f32 %v531_v14  ;;  %v1461_v22 = vmul.f32 -1.442695, %v531_v14 }
 0x3e0   :  { %v515_v17 = vpop.f32.mrf.mxu1  ;;  %1574 = vpow2.f32 %v1460_v21 }
 0x3e1   :  { %1576 = vpow2.f32 %v1461_v22 }
 0x3ea   :  { %v1571_v18 = vpop.eup %1570 }
 0x3eb   :  { %548 = vrot.lane.b32.xlu1 %v1571_v18, %s1800_s3 }
 0x3ec   :  { %v1573_v19 = vpop.eup %1572 }
 0x3ed   :  { %559 = vrot.lane.b32.xlu0 %v1573_v19, %s1800_s3  ;;  %v1575_v23 = vpop.eup %1574 }
 0x3ee   :  { %v1577_v24 = vpop.eup %1576  ;;  %v535_v25 = vadd.f32 1.0, %v1575_v23 }
 0x3ef   :  { %v541_v26 = vadd.f32 1.0, %v1577_v24 }
 0x3f0   :  { %1578 = vrcp.f32 %v535_v25 }
 0x3f1   :  { %1580 = vrcp.f32 %v541_v26 }
 0x3fd   :  { %v1579_v27 = vpop.eup %1578 }
 0x3fe   :  { %v1581_v31 = vpop.eup %1580  ;;  %v546_v38 = vmul.f32 %v1579_v27, %v2006_v36 }
 0x3ff   :  { %v557_v43 = vmul.f32 %v1581_v31, %v2012_v41 }
 0x45d   :  { %v549_v28 = vpop.permute.xlu1 %548 }
 0x45e   :  { %v551_v29 = vmul.f32 %v1579_v27, %v549_v28 }
 0x45f   :  { %v560_v32 = vpop.permute.xlu0 %559 }
 0x460   :  { %553 = vrot.lane.b32.xlu1 %v551_v29, %s1800_s3  ;;  %v562_v33 = vmul.f32 %v1581_v31, %v560_v32 }
 0x462   :  { %564 = vrot.lane.b32.xlu0 %v562_v33, %s1800_s3 }
 0x464   :  { %584 = vperm.xlu1 %1527, %v582_v34  }
 0x466   :  { %590 = vperm.xlu0 %1526, %v588_v35  }
 0x4d2   :  { %v554_v39 = vpop.permute.xlu1 %553 }
 0x4d3   :  { %v2014_v42 = vadd.f32 %v554_v39, %v546_v38  ;;  %v715_v39 = vsel %vm713_vm10, 1, %v1798_v0 }
 0x4d4   :  { %v565_v46 = vpop.permute.xlu0 %564 }
 0x4d5   :  { %1582 = vtanh.f32 %v2014_v42  ;;  %v2018_v49 = vadd.f32 %v565_v46, %v557_v43  ;;  %v721_v43 = vsel %vm714_vm11, 1, %v1798_v0 }
 0x4d7   :  { %1584 = vtanh.f32 %v2018_v49 }
 0x4df   :  { %v2023_v53 = vpop.permute.xlu1 %584 }
 0x4e0   :  { %vm586_vm8 = vcmp.eq.s32.totalorder %v2023_v53, 1  ;;  %v1553_v53 = vld [vmem:[#allocation9] sm:$0xff]  }
 0x4e1   :  { %v2025_v44 = vpop.permute.xlu0 %590  ;;  %v2068_v46 = vsel %vm586_vm8, %v2014_v42, %v2006_v36 }
 0x4e2   :  { %v1583_v40 = vpop.eup %1582  ;;  %vm592_vm9 = vcmp.eq.s32.totalorder %v2025_v44, 1  ;;  %v1552_v44 = vld [vmem:[#allocation9 + $0x8] sm:$0xff]  }
 0x4e3   :  { %570 = vrot.lane.b32.xlu1 %v1583_v40, %s1800_s3 }
 0x4e4   :  { %v1585_v50 = vpop.eup %1584 }
 0x4e5   :  { %576 = vrot.lane.b32.xlu0 %v1585_v50, %s1800_s3 }
 0x555   :  { %v571_v54 = vpop.permute.xlu1 %570 }
 0x556   :  { %v573_v57 = vmul.f32 %v1579_v27, %v571_v54 }
 0x557   :  { %v577_v58 = vpop.permute.xlu0 %576 }
 0x558   :  { %v2031_v59 = vsel %vm586_vm8, %v573_v57, %v1971_v52  ;;  %v579_v60 = vmul.f32 %v1581_v31, %v577_v58  ;;  %v2077_v57 = vsel %vm592_vm9, %v2018_v49, %v2012_v41 }
 0x559   :  { %597 = vrot.lane.b32.xlu1 %v2031_v59, %s1794_s11 }
 0x55a   :  { %v2039_v61 = vsel %vm592_vm9, %v579_v60, %v1978_v55  ;;  %v661_v55 = vrot.slane %v1936_v62, 4 }
 0x55b   :  { %601 = vrot.lane.b32.xlu0 %v2039_v61, %s1801_s1 }
 0x55c   :  { %v663_v15 = vunpack.c.l.bf16 %v661_v55 }
 0x5cb   :  { %v598_v63 = vpop.permute.xlu1 %597 }
 0x5cd   :  { %v602_v1 = vpop.permute.xlu0 %601 }
 0x5ce   :  { %v604_v3 = vsel %vm147_vm0, %v598_v63, %v602_v1 }
 0x5cf   :  { %v605_v52 = vpack.c.bf16 %v604_v3, %v604_v3 }
 0x5d1   :  { %1462 = vmatmul.mubr.msk.bf16.vlgmr.msra.gmra.mxu0 %vm339_vm5, %v605_v52 }
 0x5d2   :  { %884 = vmatpush1.bf16.msra.mxu0 %v1873_v4  ;;  %907 = vmatprep.mubr.bf16.mxu0 %v1798_v0 }
 0x5d3   :  { %885 = vmatprep.subr.bf16.mxu0 %v1877_v6 }
 0x5d6   :  { %886 = vmatpush1.bf16.msra.mxu0 %v1879_v8 }
 0x5d7   :  { %887 = vmatprep.subr.bf16.mxu0 %v1882_v10 }
 0x5da   :  { %888 = vmatpush1.bf16.msra.mxu0 %v1885_v11 }
 0x5db   :  { %889 = vmatprep.subr.bf16.mxu0 %v1888_v12 }
 0x5de   :  { %890 = vmatpush1.bf16.msra.mxu0 %v1893_v13 }
 0x5df   :  { %1109 = vmatprep.subr.bf16.mxu0 %v1871_v2 }
 0x691   :  { %v643_v9 = vpop.f32.mrf.mxu0 }
 0x692   :  { %v659_v14 = vadd.f32 %v658_v5, %v643_v9 }
 0x693   :  { %v645_v17 = vpop.f32.mrf.mxu0 }
 0x694   :  { %1586 = vtanh.f32 %v659_v14  ;;  %v664_v18 = vadd.f32 %v663_v15, %v645_v17  ;;  %v1463_v24 = vmul.f32 -1.442695, %v659_v14 }
 0x695   :  { %v647_v19 = vpop.f32.mrf.mxu0 }
 0x696   :  { %1588 = vtanh.f32 %v664_v18  ;;  %v1464_v25 = vmul.f32 -1.442695, %v664_v18  ;;  %v791_v18 = vunpack.c.l.bf16 %v1932_v51 }
 0x697   :  { %v648_v21 = vpop.f32.mrf.mxu0  ;;  %1590 = vpow2.f32 %v1463_v24 }
 0x698   :  { %1592 = vpow2.f32 %v1464_v25 }
 0x6a1   :  { %v1587_v22 = vpop.eup %1586 }
 0x6a2   :  { %681 = vrot.lane.b32.xlu1 %v1587_v22, %s1800_s3 }
 0x6a3   :  { %v1589_v23 = vpop.eup %1588 }
 0x6a4   :  { %692 = vrot.lane.b32.xlu0 %v1589_v23, %s1800_s3  ;;  %v1591_v26 = vpop.eup %1590 }
 0x6a5   :  { %v1593_v27 = vpop.eup %1592  ;;  %v668_v28 = vadd.f32 1.0, %v1591_v26 }
 0x6a6   :  { %v674_v29 = vadd.f32 1.0, %v1593_v27 }
 0x6a7   :  { %1594 = vrcp.f32 %v668_v28 }
 0x6a8   :  { %1596 = vrcp.f32 %v674_v29 }
 0x6b4   :  { %v1595_v31 = vpop.eup %1594 }
 0x6b5   :  { %v1597_v34 = vpop.eup %1596  ;;  %v679_v40 = vmul.f32 %v1595_v31, %v2068_v46 }
 0x6b6   :  { %v690_v58 = vmul.f32 %v1597_v34, %v2077_v57 }
 0x714   :  { %v682_v32 = vpop.permute.xlu1 %681 }
 0x715   :  { %v684_v33 = vmul.f32 %v1595_v31, %v682_v32 }
 0x716   :  { %v693_v35 = vpop.permute.xlu0 %692 }
 0x717   :  { %686 = vrot.lane.b32.xlu1 %v684_v33, %s1800_s3  ;;  %v695_v38 = vmul.f32 %v1597_v34, %v693_v35 }
 0x719   :  { %697 = vrot.lane.b32.xlu0 %v695_v38, %s1800_s3 }
 0x71b   :  { %717 = vperm.xlu1 %1527, %v715_v39  }
 0x71d   :  { %723 = vperm.xlu0 %1526, %v721_v43  }
 0x789   :  { %v687_v50 = vpop.permute.xlu1 %686 }
 0x78a   :  { %v2071_v54 = vadd.f32 %v687_v50, %v679_v40 }
 0x78b   :  { %v698_v60 = vpop.permute.xlu0 %697 }
 0x78c   :  { %1598 = vtanh.f32 %v2071_v54  ;;  %v2081_v63 = vadd.f32 %v698_v60, %v690_v58  ;;  %v848_v58 = vsel %vm846_vm14, 1, %v1798_v0  ;;  %v854_v60 = vsel %vm847_vm15, 1, %v1798_v0 }
 0x78e   :  { %1600 = vtanh.f32 %v2081_v63 }
 0x796   :  { %v2086_v1 = vpop.permute.xlu1 %717 }
 0x797   :  { %vm719_vm12 = vcmp.eq.s32.totalorder %v2086_v1, 1 }
 0x798   :  { %v2088_v3 = vpop.permute.xlu0 %723 }
 0x799   :  { %v1599_v36 = vpop.eup %1598  ;;  %vm725_vm13 = vcmp.eq.s32.totalorder %v2088_v3, 1 }
 0x79a   :  { %703 = vrot.lane.b32.xlu1 %v1599_v36, %s1800_s3  ;;  %v2131_v36 = vsel %vm719_vm12, %v2071_v54, %v2068_v46  ;;  %v2140_v20 = vsel %vm725_vm13, %v2081_v63, %v2077_v57 }
 0x79b   :  { %v1601_v42 = vpop.eup %1600 }
 0x79c   :  { %709 = vrot.lane.b32.xlu0 %v1601_v42, %s1800_s3 }
 0x80c   :  { %v704_v41 = vpop.permute.xlu1 %703 }
 0x80d   :  { %v706_v49 = vmul.f32 %v1595_v31, %v704_v41 }
 0x80e   :  { %v710_v52 = vpop.permute.xlu0 %709 }
 0x80f   :  { %v2094_v55 = vsel %vm719_vm12, %v706_v49, %v2031_v59  ;;  %v712_v5 = vmul.f32 %v1597_v34, %v710_v52 }
 0x810   :  { %730 = vrot.lane.b32.xlu1 %v2094_v55, %s1794_s11 }
 0x811   :  { %v2102_v9 = vsel %vm725_vm13, %v712_v5, %v2039_v61  ;;  %v794_v61 = vrot.slane %v1934_v56, 4 }
 0x812   :  { %734 = vrot.lane.b32.xlu0 %v2102_v9, %s1801_s1 }
 0x813   :  { %v796_v22 = vunpack.c.l.bf16 %v794_v61 }
 0x882   :  { %v731_v14 = vpop.permute.xlu1 %730 }
 0x884   :  { %v735_v15 = vpop.permute.xlu0 %734 }
 0x885   :  { %v737_v17 = vsel %vm147_vm0, %v731_v14, %v735_v15 }
 0x886   :  { %v738_v59 = vpack.c.bf16 %v737_v17, %v737_v17 }
 0x888   :  { %1465 = vmatmul.mubr.msk.bf16.vlgmr.msra.gmra.mxu1 %vm339_vm5, %v738_v59 }
 0x889   :  { %997 = vmatpush1.bf16.msra.mxu1 %v1873_v4  ;;  %1020 = vmatprep.mubr.bf16.mxu1 %v1798_v0 }
 0x88a   :  { %998 = vmatprep.subr.bf16.mxu1 %v1877_v6 }
 0x88d   :  { %999 = vmatpush1.bf16.msra.mxu1 %v1879_v8 }
 0x88e   :  { %1000 = vmatprep.subr.bf16.mxu1 %v1882_v10 }
 0x891   :  { %1001 = vmatpush1.bf16.msra.mxu1 %v1885_v11 }
 0x892   :  { %1002 = vmatprep.subr.bf16.mxu1 %v1888_v12 }
 0x895   :  { %1003 = vmatpush1.bf16.msra.mxu1 %v1893_v13 }
 0x896   :  { %1222 = vmatprep.subr.bf16.mxu1 %v1871_v2 }
 0x948   :  { %v776_v19 = vpop.f32.mrf.mxu1 }
 0x949   :  { %v792_v21 = vadd.f32 %v791_v18, %v776_v19 }
 0x94a   :  { %v778_v23 = vpop.f32.mrf.mxu1 }
 0x94b   :  { %1602 = vtanh.f32 %v792_v21  ;;  %v797_v24 = vadd.f32 %v796_v22, %v778_v23  ;;  %v1466_v2 = vmul.f32 -1.442695, %v792_v21 }
 0x94c   :  { %v780_v25 = vpop.f32.mrf.mxu1 }
 0x94d   :  { %1604 = vtanh.f32 %v797_v24  ;;  %v1467_v29 = vmul.f32 -1.442695, %v797_v24  ;;  %v916_v24 = vunpack.c.l.bf16 %v1934_v56 }
 0x94e   :  { %v781_v26 = vpop.f32.mrf.mxu1  ;;  %1606 = vpow2.f32 %v1466_v2 }
 0x94f   :  { %1608 = vpow2.f32 %v1467_v29 }
 0x958   :  { %v1603_v27 = vpop.eup %1602 }
 0x959   :  { %814 = vrot.lane.b32.xlu1 %v1603_v27, %s1800_s3 }
 0x95a   :  { %v1605_v28 = vpop.eup %1604 }
 0x95b   :  { %825 = vrot.lane.b32.xlu0 %v1605_v28, %s1800_s3  ;;  %v1607_v31 = vpop.eup %1606 }
 0x95c   :  { %v1609_v32 = vpop.eup %1608  ;;  %v801_v33 = vadd.f32 1.0, %v1607_v31 }
 0x95d   :  { %v807_v34 = vadd.f32 1.0, %v1609_v32 }
 0x95e   :  { %1610 = vrcp.f32 %v801_v33 }
 0x95f   :  { %1612 = vrcp.f32 %v807_v34 }
 0x96b   :  { %v1611_v35 = vpop.eup %1610 }
 0x96c   :  { %v1613_v43 = vpop.eup %1612  ;;  %v812_v42 = vmul.f32 %v1611_v35, %v2131_v36 }
 0x96d   :  { %v823_v52 = vmul.f32 %v1613_v43, %v2140_v20 }
 0x9cb   :  { %v815_v38 = vpop.permute.xlu1 %814 }
 0x9cc   :  { %v817_v39 = vmul.f32 %v1611_v35, %v815_v38 }
 0x9cd   :  { %v826_v40 = vpop.permute.xlu0 %825 }
 0x9ce   :  { %819 = vrot.lane.b32.xlu1 %v817_v39, %s1800_s3  ;;  %v828_v50 = vmul.f32 %v1613_v43, %v826_v40 }
 0x9d0   :  { %830 = vrot.lane.b32.xlu0 %v828_v50, %s1800_s3 }
 0x9d2   :  { %850 = vperm.xlu1 %1527, %v848_v58  }
 0x9d4   :  { %856 = vperm.xlu0 %1526, %v854_v60  }
 0xa40   :  { %v820_v41 = vpop.permute.xlu1 %819 }
 0xa41   :  { %v2134_v49 = vadd.f32 %v820_v41, %v812_v42 }
 0xa42   :  { %v831_v5 = vpop.permute.xlu0 %830 }
 0xa43   :  { %1614 = vtanh.f32 %v2134_v49  ;;  %v2144_v14 = vadd.f32 %v831_v5, %v823_v52 }
 0xa45   :  { %1616 = vtanh.f32 %v2144_v14 }
 0xa4d   :  { %v2149_v15 = vpop.permute.xlu1 %850 }
 0xa4e   :  { %vm852_vm1 = vcmp.eq.s32.totalorder %v2149_v15, 1 }
 0xa4f   :  { %v2151_v17 = vpop.permute.xlu0 %856  ;;  %v2189_v41 = vsel %vm852_vm1, %v2134_v49, %v2131_v36 }
 0xa50   :  { %v1615_v46 = vpop.eup %1614  ;;  %vm858_vm2 = vcmp.eq.s32.totalorder %v2151_v17, 1 }
 0xa51   :  { %836 = vrot.lane.b32.xlu1 %v1615_v46, %s1800_s3 }
 0xa52   :  { %v1617_v54 = vpop.eup %1616 }
 0xa53   :  { %842 = vrot.lane.b32.xlu0 %v1617_v54, %s1800_s3  ;;  %v2198_v54 = vsel %vm858_vm2, %v2144_v14, %v2140_v20 }
 0xac3   :  { %v837_v57 = vpop.permute.xlu1 %836 }
 0xac4   :  { %v839_v63 = vmul.f32 %v1611_v35, %v837_v57 }
 0xac5   :  { %v843_v59 = vpop.permute.xlu0 %842 }
 0xac6   :  { %v2157_v61 = vsel %vm852_vm1, %v839_v63, %v2094_v55  ;;  %v845_v18 = vmul.f32 %v1613_v43, %v843_v59 }
 0xac7   :  { %863 = vrot.lane.b32.xlu1 %v2157_v61, %s1794_s11 }
 0xac8   :  { %v2165_v19 = vsel %vm858_vm2, %v845_v18, %v2102_v9  ;;  %v919_v9 = vrot.slane %v1932_v51, 4 }
 0xac9   :  { %867 = vrot.lane.b32.xlu0 %v2165_v19, %s1801_s1 }
 0xaca   :  { %v921_v27 = vunpack.c.l.bf16 %v919_v9 }
 0xb39   :  { %v864_v21 = vpop.permute.xlu1 %863 }
 0xb3b   :  { %v868_v22 = vpop.permute.xlu0 %867 }
 0xb3c   :  { %v870_v23 = vsel %vm147_vm0, %v864_v21, %v868_v22 }
 0xb3d   :  { %v871_v55 = vpack.c.bf16 %v870_v23, %v870_v23 }
 0xb3f   :  { %1468 = vmatmul.mubr.msk.bf16.vlgmr.msra.gmra.mxu0 %vm339_vm5, %v871_v55 }
 0xb40   :  { %1110 = vmatpush1.bf16.msra.mxu0 %v1873_v4  ;;  %1133 = vmatprep.mubr.bf16.mxu0 %v1798_v0 }
 0xb41   :  { %1111 = vmatprep.subr.bf16.mxu0 %v1877_v6 }
 0xb44   :  { %1112 = vmatpush1.bf16.msra.mxu0 %v1879_v8 }
 0xb45   :  { %1113 = vmatprep.subr.bf16.mxu0 %v1882_v10 }
 0xb48   :  { %1114 = vmatpush1.bf16.msra.mxu0 %v1885_v11 }
 0xb49   :  { %1115 = vmatprep.subr.bf16.mxu0 %v1888_v12 }
 0xb4c   :  { %1116 = vmatpush1.bf16.msra.mxu0 %v1893_v13 }
 0xbff   :  { %v909_v25 = vpop.f32.mrf.mxu0 }
 0xc00   :  { %v917_v26 = vadd.f32 %v916_v24, %v909_v25 }
 0xc01   :  { %v911_v28 = vpop.f32.mrf.mxu0 }
 0xc02   :  { %1618 = vtanh.f32 %v917_v26  ;;  %v922_v2 = vadd.f32 %v921_v27, %v911_v28  ;;  %v1469_v34 = vmul.f32 -1.442695, %v917_v26 }
 0xc03   :  { %v913_v29 = vpop.f32.mrf.mxu0 }
 0xc04   :  { %1620 = vtanh.f32 %v922_v2  ;;  %v1470_v35 = vmul.f32 -1.442695, %v922_v2 }
 0xc05   :  { %v914_v31 = vpop.f32.mrf.mxu0  ;;  %1622 = vpow2.f32 %v1469_v34 }
 0xc06   :  { %1624 = vpow2.f32 %v1470_v35 }
 0xc0f   :  { %v1619_v32 = vpop.eup %1618 }
 0xc10   :  { %939 = vrot.lane.b32.xlu1 %v1619_v32, %s1800_s3 }
 0xc11   :  { %v1621_v33 = vpop.eup %1620 }
 0xc12   :  { %950 = vrot.lane.b32.xlu0 %v1621_v33, %s1800_s3  ;;  %v1623_v51 = vpop.eup %1622 }
 0xc13   :  { %v1625_v56 = vpop.eup %1624  ;;  %v926_v38 = vadd.f32 1.0, %v1623_v51 }
 0xc14   :  { %v932_v39 = vadd.f32 1.0, %v1625_v56 }
 0xc15   :  { %1626 = vrcp.f32 %v926_v38 }
 0xc16   :  { %1628 = vrcp.f32 %v932_v39 }
 0xc22   :  { %v1627_v43 = vpop.eup %1626 }
 0xc23   :  { %v1629_v58 = vpop.eup %1628  ;;  %v937_v52 = vmul.f32 %v1627_v43, %v2189_v41 }
 0xc24   :  { %v948_v57 = vmul.f32 %v1629_v58, %v2198_v54 }
 0xc82   :  { %v940_v40 = vpop.permute.xlu1 %939 }
 0xc83   :  { %v942_v50 = vmul.f32 %v1627_v43, %v940_v40 }
 0xc84   :  { %v951_v60 = vpop.permute.xlu0 %950 }
 0xc85   :  { %944 = vrot.lane.b32.xlu1 %v942_v50, %s1800_s3  ;;  %v953_v42 = vmul.f32 %v1629_v58, %v951_v60 }
 0xc87   :  { %955 = vrot.lane.b32.xlu0 %v953_v42, %s1800_s3 }
 0xcf7   :  { %v945_v5 = vpop.permute.xlu1 %944 }
 0xcf8   :  { %v2192_v46 = vadd.f32 %v945_v5, %v937_v52 }
 0xcf9   :  { %v956_v63 = vpop.permute.xlu0 %955 }
 0xcfa   :  { %1630 = vtanh.f32 %v2192_v46  ;;  %v2202_v59 = vadd.f32 %v956_v63, %v948_v57  ;;  %v973_v56 = vsel %vm858_vm2, %v2192_v46, %v2189_v41 }
 0xcfc   :  { %1632 = vtanh.f32 %v2202_v59  ;;  %v974_v40 = vsel %vm852_vm1, %v2202_v59, %v2198_v54 }
 0xd07   :  { %v1631_v36 = vpop.eup %1630 }
 0xd08   :  { %961 = vrot.lane.b32.xlu1 %v1631_v36, %s1800_s3 }
 0xd09   :  { %v1633_v49 = vpop.eup %1632 }
 0xd0a   :  { %967 = vrot.lane.b32.xlu0 %v1633_v49, %s1800_s3  ;;  %v1145_v49 = vrot.slane %v1928_v37, 4 }
 0xd7a   :  { %v962_v18 = vpop.permute.xlu1 %961 }
 0xd7b   :  { %v964_v21 = vmul.f32 %v1627_v43, %v962_v18  ;;  %v1142_v18 = vunpack.c.l.bf16 %v1939_v7 }
 0xd7c   :  { %v968_v22 = vpop.permute.xlu0 %967 }
 0xd7d   :  { %v2210_v20 = vsel %vm858_vm2, %v964_v21, %v2157_v61  ;;  %v970_v14 = vmul.f32 %v1629_v58, %v968_v22  ;;  %v1032_v61 = vrot.slane %v1930_v45, 4 }
 0xd7e   :  { %976 = vrot.lane.b32.xlu1 %v2210_v20, %s1794_s11 }
 0xd7f   :  { %v2217_v23 = vsel %vm852_vm1, %v970_v14, %v2165_v19  ;;  %v1029_v19 = vunpack.c.l.bf16 %v1936_v62  ;;  %v1034_v27 = vunpack.c.l.bf16 %v1032_v61 }
 0xd80   :  { %980 = vrot.lane.b32.xlu0 %v2217_v23, %s1801_s1 }
 0xdf0   :  { %v977_v55 = vpop.permute.xlu1 %976 }
 0xdf2   :  { %v981_v9 = vpop.permute.xlu0 %980 }
 0xdf3   :  { %v983_v24 = vsel %vm147_vm0, %v977_v55, %v981_v9 }
 0xdf4   :  { %v984_v25 = vpack.c.bf16 %v983_v24, %v983_v24 }
 0xdf6   :  { %1471 = vmatmul.mubr.msk.bf16.vlgmr.msra.gmra.mxu1 %vm339_vm5, %v984_v25 }
 0xdf7   :  { %1223 = vmatpush1.bf16.msra.mxu1 %v1873_v4  ;;  %1246 = vmatprep.mubr.bf16.mxu1 %v1798_v0 }
 0xdf8   :  { %1224 = vmatprep.subr.bf16.mxu1 %v1877_v6 }
 0xdfb   :  { %1225 = vmatpush1.bf16.msra.mxu1 %v1879_v8 }
 0xdfc   :  { %1226 = vmatprep.subr.bf16.mxu1 %v1882_v10 }
 0xdff   :  { %1227 = vmatpush1.bf16.msra.mxu1 %v1885_v11 }
 0xe00   :  { %1228 = vmatprep.subr.bf16.mxu1 %v1888_v12 }
 0xe03   :  { %1229 = vmatpush1.bf16.msra.mxu1 %v1893_v13 }
 0xeb6   :  { %v1022_v26 = vpop.f32.mrf.mxu1 }
 0xeb7   :  { %v1030_v4 = vadd.f32 %v1029_v19, %v1022_v26 }
 0xeb8   :  { %v1024_v0 = vpop.f32.mrf.mxu1 }
 0xeb9   :  { %1634 = vtanh.f32 %v1030_v4  ;;  %v1035_v6 = vadd.f32 %v1034_v27, %v1024_v0  ;;  %v1472_v12 = vmul.f32 -1.442695, %v1030_v4 }
 0xeba   :  { %v1026_v28 = vpop.f32.mrf.mxu1 }
 0xebb   :  { %1636 = vtanh.f32 %v1035_v6  ;;  %v1473_v13 = vmul.f32 -1.442695, %v1035_v6 }
 0xebc   :  { %v1027_v8 = vpop.f32.mrf.mxu1  ;;  %1638 = vpow2.f32 %v1472_v12 }
 0xebd   :  { %1640 = vpow2.f32 %v1473_v13 }
 0xec6   :  { %v1635_v10 = vpop.eup %1634 }
 0xec7   :  { %1052 = vrot.lane.b32.xlu1 %v1635_v10, %s1800_s3 }
 0xec8   :  { %v1637_v11 = vpop.eup %1636 }
 0xec9   :  { %1063 = vrot.lane.b32.xlu0 %v1637_v11, %s1800_s3  ;;  %v1639_v45 = vpop.eup %1638 }
 0xeca   :  { %v1641_v62 = vpop.eup %1640  ;;  %v1039_v2 = vadd.f32 1.0, %v1639_v45 }
 0xecb   :  { %v1045_v29 = vadd.f32 1.0, %v1641_v62 }
 0xecc   :  { %1642 = vrcp.f32 %v1039_v2 }
 0xecd   :  { %1644 = vrcp.f32 %v1045_v29 }
 0xed9   :  { %v1643_v31 = vpop.eup %1642 }
 0xeda   :  { %v1645_v34 = vpop.eup %1644  ;;  %v1050_v38 = vmul.f32 %v1643_v31, %v973_v56 }
 0xedb   :  { %v1061_v50 = vmul.f32 %v1645_v34, %v974_v40 }
 0xf39   :  { %v1053_v32 = vpop.permute.xlu1 %1052 }
 0xf3a   :  { %v1055_v33 = vmul.f32 %v1643_v31, %v1053_v32 }
 0xf3b   :  { %v1064_v35 = vpop.permute.xlu0 %1063 }
 0xf3c   :  { %1057 = vrot.lane.b32.xlu1 %v1055_v33, %s1800_s3  ;;  %v1066_v51 = vmul.f32 %v1645_v34, %v1064_v35 }
 0xf3e   :  { %1068 = vrot.lane.b32.xlu0 %v1066_v51, %s1800_s3 }
 0xfae   :  { %v1058_v39 = vpop.permute.xlu1 %1057 }
 0xfaf   :  { %v1060_v43 = vadd.f32 %v1058_v39, %v1050_v38 }
 0xfb0   :  { %v1069_v58 = vpop.permute.xlu0 %1068 }
 0xfb1   :  { %1646 = vtanh.f32 %v1060_v43  ;;  %v1071_v60 = vadd.f32 %v1069_v58, %v1061_v50  ;;  %v1086_v11 = vsel %vm725_vm13, %v1060_v43, %v973_v56  ;;  %v1258_v50 = vrot.slane %v1925_v30, 4 }
 0xfb2   :  { %v1255_v58 = vunpack.c.l.bf16 %v1941_v16 }
 0xfb3   :  { %1648 = vtanh.f32 %v1071_v60  ;;  %v1087_v62 = vsel %vm719_vm12, %v1071_v60, %v974_v40 }
 0xfbe   :  { %v1647_v42 = vpop.eup %1646 }
 0xfbf   :  { %1074 = vrot.lane.b32.xlu1 %v1647_v42, %s1800_s3 }
 0xfc0   :  { %v1649_v52 = vpop.eup %1648 }
 0xfc1   :  { %1080 = vrot.lane.b32.xlu0 %v1649_v52, %s1800_s3  ;;  %v1260_v52 = vunpack.c.l.bf16 %v1258_v50 }
0x1031   :  { %v1075_v17 = vpop.permute.xlu1 %1074 }
0x1032   :  { %v1077_v41 = vmul.f32 %v1643_v31, %v1075_v17 }
0x1033   :  { %v1081_v5 = vpop.permute.xlu0 %1080 }
0x1034   :  { %v1084_v46 = vsel %vm725_vm13, %v1077_v41, %v2210_v20  ;;  %v1083_v15 = vmul.f32 %v1645_v34, %v1081_v5  ;;  %v1147_v20 = vunpack.c.l.bf16 %v1145_v49 }
0x1035   :  { %1089 = vrot.lane.b32.xlu1 %v1084_v46, %s1794_s11 }
0x1036   :  { %v1085_v54 = vsel %vm719_vm12, %v1083_v15, %v2217_v23 }
0x1037   :  { %1093 = vrot.lane.b32.xlu0 %v1085_v54, %s1801_s1 }
0x10a7   :  { %v1090_v57 = vpop.permute.xlu1 %1089 }
0x10a9   :  { %v1094_v63 = vpop.permute.xlu0 %1093 }
0x10aa   :  { %v1096_v59 = vsel %vm147_vm0, %v1090_v57, %v1094_v63 }
0x10ab   :  { %v1097_v36 = vpack.c.bf16 %v1096_v59, %v1096_v59 }
0x10ad   :  { %1474 = vmatmul.mubr.msk.bf16.vlgmr.msra.gmra.mxu0 %vm339_vm5, %v1097_v36 }
0x116d   :  { %v1135_v21 = vpop.f32.mrf.mxu0 }
0x116e   :  { %v1143_v22 = vadd.f32 %v1142_v18, %v1135_v21 }
0x116f   :  { %v1137_v14 = vpop.f32.mrf.mxu0 }
0x1170   :  { %1650 = vtanh.f32 %v1143_v22  ;;  %v1148_v55 = vadd.f32 %v1147_v20, %v1137_v14  ;;  %v1475_v61 = vmul.f32 -1.442695, %v1143_v22 }
0x1171   :  { %v1139_v23 = vpop.f32.mrf.mxu0 }
0x1172   :  { %1652 = vtanh.f32 %v1148_v55  ;;  %v1476_v19 = vmul.f32 -1.442695, %v1148_v55 }
0x1173   :  { %v1140_v9 = vpop.f32.mrf.mxu0  ;;  %1654 = vpow2.f32 %v1475_v61 }
0x1174   :  { %1656 = vpow2.f32 %v1476_v19 }
0x117d   :  { %v1651_v24 = vpop.eup %1650 }
0x117e   :  { %1165 = vrot.lane.b32.xlu1 %v1651_v24, %s1800_s3 }
0x117f   :  { %v1653_v25 = vpop.eup %1652 }
0x1180   :  { %1176 = vrot.lane.b32.xlu0 %v1653_v25, %s1800_s3  ;;  %v1655_v37 = vpop.eup %1654 }
0x1181   :  { %v1657_v7 = vpop.eup %1656  ;;  %v1152_v26 = vadd.f32 1.0, %v1655_v37 }
0x1182   :  { %v1158_v4 = vadd.f32 1.0, %v1657_v7  ;;  %v1550_v7 = vld [vmem:[#allocation9 + $0x18] sm:$0xff]  }
0x1183   :  { %1658 = vrcp.f32 %v1152_v26  ;;  %v1802_v26 = vmov 0.0  }
0x1184   :  { %1660 = vrcp.f32 %v1158_v4  ;;  %1499 = vmatprep.subr.bf16.mxu0 %v1802_v26  ;;  %v1551_v4 = vld [vmem:[#allocation9 + $0x10] sm:$0xff]   ;;  %1507 = vmatprep.mubr.msk.bf16.mxu0 %vm1803_vm6, %v1802_v26 }
0x1185   :  { %1500 = vmatpush3.bf16.msra.mxu0 %v1550_v7 }
0x1186   :  { %1501 = vmatprep.subr.bf16.mxu0 %v1802_v26 }
0x1189   :  { %1502 = vmatpush3.bf16.msra.mxu0 %v1551_v4 }
0x118a   :  { %1503 = vmatprep.subr.bf16.mxu0 %v1802_v26 }
0x118d   :  { %1504 = vmatpush3.bf16.msra.mxu0 %v1552_v44 }
0x118e   :  { %1505 = vmatprep.subr.bf16.mxu0 %v1802_v26 }
0x1190   :  { %v1659_v27 = vpop.eup %1658 }
0x1191   :  { %v1661_v28 = vpop.eup %1660  ;;  %v1163_v12 = vmul.f32 %v1659_v27, %v1086_v11  ;;  %1506 = vmatpush3.bf16.msra.mxu0 %v1553_v53 }
0x1192   :  { %v1174_v2 = vmul.f32 %v1661_v28, %v1087_v62 }
0x11f0   :  { %v1166_v0 = vpop.permute.xlu1 %1165 }
0x11f1   :  { %v1168_v6 = vmul.f32 %v1659_v27, %v1166_v0 }
0x11f2   :  { %v1177_v8 = vpop.permute.xlu0 %1176 }
0x11f3   :  { %1170 = vrot.lane.b32.xlu1 %v1168_v6, %s1800_s3  ;;  %v1179_v10 = vmul.f32 %v1661_v28, %v1177_v8 }
0x11f5   :  { %1181 = vrot.lane.b32.xlu0 %v1179_v10, %s1800_s3 }
0x1265   :  { %v1171_v13 = vpop.permute.xlu1 %1170 }
0x1266   :  { %v1173_v45 = vadd.f32 %v1171_v13, %v1163_v12 }
0x1267   :  { %v1182_v29 = vpop.permute.xlu0 %1181 }
0x1268   :  { %1662 = vtanh.f32 %v1173_v45  ;;  %v1184_v31 = vadd.f32 %v1182_v29, %v1174_v2  ;;  %v1199_v55 = vsel %vm592_vm9, %v1173_v45, %v1086_v11 }
0x126a   :  { %1664 = vtanh.f32 %v1184_v31  ;;  %v1200_v25 = vsel %vm586_vm8, %v1184_v31, %v1087_v62 }
0x1275   :  { %v1663_v32 = vpop.eup %1662 }
0x1276   :  { %1187 = vrot.lane.b32.xlu1 %v1663_v32, %s1800_s3 }
0x1277   :  { %v1665_v33 = vpop.eup %1664 }
0x1278   :  { %1193 = vrot.lane.b32.xlu0 %v1665_v33, %s1800_s3 }
0x12e8   :  { %v1188_v34 = vpop.permute.xlu1 %1187 }
0x12e9   :  { %v1190_v3 = vmul.f32 %v1659_v27, %v1188_v34 }
0x12ea   :  { %v1194_v35 = vpop.permute.xlu0 %1193 }
0x12eb   :  { %v2271_v51 = vsel %vm592_vm9, %v1190_v3, %v1084_v46  ;;  %v1196_v1 = vmul.f32 %v1661_v28, %v1194_v35 }
0x12ec   :  { %1202 = vrot.lane.b32.xlu1 %v2271_v51, %s1794_s11 }
0x12ed   :  { %v2277_v56 = vsel %vm586_vm8, %v1196_v1, %v1085_v54 }
0x12ee   :  { %1206 = vrot.lane.b32.xlu0 %v2277_v56, %s1801_s1 }
0x135e   :  { %v1203_v38 = vpop.permute.xlu1 %1202 }
0x1360   :  { %v1207_v39 = vpop.permute.xlu0 %1206 }
0x1361   :  { %v1209_v43 = vsel %vm147_vm0, %v1203_v38, %v1207_v39 }
0x1362   :  { %v1210_v40 = vpack.c.bf16 %v1209_v43, %v1209_v43 }
0x1364   :  { %1477 = vmatmul.mubr.msk.bf16.vlgmr.msra.gmra.mxu1 %vm339_vm5, %v1210_v40 }
0x1424   :  { %v1248_v60 = vpop.f32.mrf.mxu1 }
0x1425   :  { %v1256_v42 = vadd.f32 %v1255_v58, %v1248_v60 }
0x1426   :  { %v1250_v17 = vpop.f32.mrf.mxu1 }
0x1427   :  { %1666 = vtanh.f32 %v1256_v42  ;;  %v1261_v41 = vadd.f32 %v1260_v52, %v1250_v17  ;;  %v1478_v57 = vmul.f32 -1.442695, %v1256_v42 }
0x1428   :  { %v1252_v5 = vpop.f32.mrf.mxu1 }
0x1429   :  { %1668 = vtanh.f32 %v1261_v41  ;;  %v1479_v63 = vmul.f32 -1.442695, %v1261_v41 }
0x142a   :  { %v1253_v46 = vpop.f32.mrf.mxu1  ;;  %1670 = vpow2.f32 %v1478_v57 }
0x142b   :  { %1672 = vpow2.f32 %v1479_v63 }
0x1434   :  { %v1667_v15 = vpop.eup %1666 }
0x1435   :  { %1278 = vrot.lane.b32.xlu1 %v1667_v15, %s1800_s3 }
0x1436   :  { %v1669_v54 = vpop.eup %1668 }
0x1437   :  { %1289 = vrot.lane.b32.xlu0 %v1669_v54, %s1800_s3  ;;  %v1671_v30 = vpop.eup %1670 }
0x1438   :  { %v1673_v16 = vpop.eup %1672  ;;  %v1265_v59 = vadd.f32 1.0, %v1671_v30 }
0x1439   :  { %v1271_v36 = vadd.f32 1.0, %v1673_v16 }
0x143a   :  { %1674 = vrcp.f32 %v1265_v59 }
0x143b   :  { %1676 = vrcp.f32 %v1271_v36 }
0x1447   :  { %v1675_v49 = vpop.eup %1674 }
0x1448   :  { %v1677_v22 = vpop.eup %1676  ;;  %v1276_v23 = vmul.f32 %v1675_v49, %v1199_v55 }
0x1449   :  { %v1287_v61 = vmul.f32 %v1677_v22, %v1200_v25 }
0x14a7   :  { %v1279_v18 = vpop.permute.xlu1 %1278 }
0x14a8   :  { %v1281_v21 = vmul.f32 %v1675_v49, %v1279_v18 }
0x14a9   :  { %v1290_v20 = vpop.permute.xlu0 %1289 }
0x14aa   :  { %1283 = vrot.lane.b32.xlu1 %v1281_v21, %s1800_s3  ;;  %v1292_v14 = vmul.f32 %v1677_v22, %v1290_v20 }
0x14ac   :  { %1294 = vrot.lane.b32.xlu0 %v1292_v14, %s1800_s3 }
0x151c   :  { %v1284_v9 = vpop.permute.xlu1 %1283 }
0x151d   :  { %v1286_v24 = vadd.f32 %v1284_v9, %v1276_v23 }
0x151e   :  { %v1295_v19 = vpop.permute.xlu0 %1294 }
0x151f   :  { %1678 = vtanh.f32 %v1286_v24  ;;  %v1297_v37 = vadd.f32 %v1295_v19, %v1287_v61 }
0x1521   :  { %1680 = vtanh.f32 %v1297_v37 }
0x152c   :  { %v1679_v27 = vpop.eup %1678 }
0x152d   :  { %1300 = vrot.lane.b32.xlu1 %v1679_v27, %s1800_s3 }
0x152e   :  { %v1681_v0 = vpop.eup %1680 }
0x152f   :  { %1306 = vrot.lane.b32.xlu0 %v1681_v0, %s1800_s3 }
0x159f   :  { %v1301_v6 = vpop.permute.xlu1 %1300 }
0x15a0   :  { %v1303_v28 = vmul.f32 %v1675_v49, %v1301_v6 }
0x15a1   :  { %v1307_v8 = vpop.permute.xlu0 %1306 }
0x15a2   :  { %v1310_v10 = vsel %vm459_vm4, %v1303_v28, %v2271_v51  ;;  %v1309_v11 = vmul.f32 %v1677_v22, %v1307_v8 }
0x15a3   :  { %1313 = vrot.lane.b32.xlu1 %v1310_v10, %s1794_s11 }
0x15a4   :  { %v1311_v12 = vsel %vm453_vm3, %v1309_v11, %v2277_v56 }
0x15a5   :  { %1317 = vrot.lane.b32.xlu0 %v1311_v12, %s1801_s1 }
0x1615   :  { %v1314_v13 = vpop.permute.xlu1 %1313 }
0x1617   :  { %v1318_v45 = vpop.permute.xlu0 %1317 }
0x1618   :  { %v1320_v62 = vsel %vm147_vm0, %v1314_v13, %v1318_v45 }
0x1619   :  { %v1321_v2 = vpack.c.bf16 %v1320_v62, %v1320_v62 }
0x161b   :  { %1508 = vmatmul.mubr.msk.bf16.vlgmr.msra.gmra.mxu0 %vm339_vm5, %v1321_v2 }
0x16db   :  { %v1398_v29 = vpop.f32.mrf.mxu0 }
0x16dc   :  { %v1399_v31 = vadd.f32 %v1480_v47, %v1398_v29 }
0x16dd   :  { %v1509_v48 = vpop.f32.mrf.mxu0 }
0x16de   :  { %1404 = vst [vmem:[#allocation11] sm:$0xff] %v1399_v31 }
0x16df   :  { %v1401_v32 = vpop.f32.mrf.mxu0 }
0x16e0   :  { %1773 = shalt.err (!%p1770_p10)
}
0x16e1   :  { %1414 = dma.vmem_to_hbm [thread:$0]  %s1412_s28, 128, %s2318_s7, [#allocation5]   ;;  %v1510_v33 = vpop.f32.mrf.mxu0 }
0x16e2   :  { %1788 = dma.done.wait [#allocation5], 128  }
0x16e3   :  { %1789 = vsyncadd [#allocation5], 4294967168 }
0x16e4   :  { %1418 = vsyncpa [#allocation4], 1 }
0x16e5   :  { %1419 = vsyncpa [#allocation7], 1 }
0x16e6   :  { %1420 = vsyncpa [#allocation10], 1 }
0x16e7   :  { %1421 = vsyncpa [#allocation5], 1 }

</bundles_post_ra>
